<compile_context>
chip_gen: v5e
topology: v5e:2x2
jax: 0.10.0
libtpu: 0.0.40
codegen_flags: <defaults>
</compile_context>

<pallas_src>
import functools
import math

import jax
import jax.numpy as jnp
from jax.experimental import pallas as pl
from jax.experimental.pallas import tpu as pltpu

EPS = 1e-5      # PyTorch GroupNorm default eps
GUARD = 8       # extra zero rows at both ends of the padded conv scratch


# ----------------------------- shared pieces ------------------------------ #

def _group_norm(x, gamma, beta, cg, gc, n_per_group):
    """GroupNorm over one batch element.

    x: (N, C) f32, gamma/beta: (1, C), cg: (C, G) one-hot group membership,
    gc: (G, C) = cg.T.  Two-pass (mean, then centered variance) for stability.
    """
    s1 = jnp.sum(x, axis=0, keepdims=True)                             # (1, C)
    mean_g = jnp.dot(s1, cg, preferred_element_type=jnp.float32) / n_per_group
    mean_c = jnp.dot(mean_g, gc, preferred_element_type=jnp.float32)   # (1, C)
    xc = x - mean_c
    s2 = jnp.sum(xc * xc, axis=0, keepdims=True)                       # (1, C)
    var_g = jnp.dot(s2, cg, preferred_element_type=jnp.float32) / n_per_group
    inv_c = jnp.dot(jax.lax.rsqrt(var_g + EPS), gc,
                    preferred_element_type=jnp.float32)                # (1, C)
    return xc * (inv_c * gamma) + beta


# ------------------------ fused GN+Swish+Conv3x3 --------------------------- #
# TODO(synk): row-tile this kernel (halo DMA + two-pass group stats) once
#             H*W*C grows beyond a few MiB per image so it still fits v7x VMEM.

def fused_block_kernel(*refs, H, W, n_per_group, has_bias, has_res):
    """(x [+bias]) -> GroupNorm -> Swish -> Conv3x3(+b) [+res], one batch elem."""
    it = iter(refs)
    x_ref = next(it)
    bias_ref = next(it) if has_bias else None
    gamma_ref = next(it)
    beta_ref = next(it)
    cg_ref = next(it)
    gc_ref = next(it)
    w_ref = next(it)          # (9, Cin, Cout) bf16, tap t = (dy+1)*3 + (dx+1)
    b_ref = next(it)          # (1, Cout) f32
    res_ref = next(it) if has_res else None
    o_ref = next(it)
    buf_ref = next(it)        # VMEM scratch ((H+2)*W + 2*GUARD, Cin) f32

    HW = H * W
    x = x_ref[0]                                          # (HW, C) f32
    if has_bias:
        x = x + bias_ref[0]                               # (1, C) channel bias
    y = _group_norm(x, gamma_ref[...], beta_ref[...], cg_ref[...], gc_ref[...],
                    n_per_group)
    y = y * jax.nn.sigmoid(y)                             # Swish

    # Zero-padded, row-flattened image:
    #   [GUARD zeros][W top-pad][H*W data][W bottom-pad][GUARD zeros]
    data0 = GUARD + W
    buf_ref[...] = jnp.zeros(buf_ref.shape, jnp.float32)
    buf_ref[data0:data0 + HW, :] = y
    buf = buf_ref[...]
    rbuf = buf.shape[0]

    # Spatial column index of every buffer row (valid on data rows; pad rows
    # are zero so the mask value there is irrelevant).
    shift = (-data0) % W
    wcol = (jax.lax.broadcasted_iota(jnp.int32, (rbuf, 1), 0) + shift) % W

    w = w_ref[...]                                        # (9, Cin, Cout) bf16
    cout = w.shape[2]
    acc = jnp.zeros((HW, cout), jnp.float32)
    for dx in (-1, 0, 1):
        if dx == 0:
            src = buf
        else:
            # For dx=+1 the wrapped reads land on column 0 of the next spatial
            # row; for dx=-1 on column W-1 of the previous one.  Zero them.
            forbidden = 0 if dx == 1 else (W - 1)
            src = jnp.where(wcol != forbidden, buf, 0.0)
        for dy in (-1, 0, 1):
            t = (dy + 1) * 3 + (dx + 1)
            start = data0 + (dy * W) + dx                 # static leading slice
            xs = src[start:start + HW, :].astype(jnp.bfloat16)
            acc = acc + jnp.dot(xs, w[t], preferred_element_type=jnp.float32)

    out = acc + b_ref[...]
    if has_res:
        out = out + res_ref[0]
    o_ref[0] = out


def fused_gn_swish_conv(x, gamma, beta, cg, gc, w_bf16, b, H, W, *,
                        n_per_group, bias=None, res=None):
    B, HW, C = x.shape
    Cout = w_bf16.shape[2]
    has_bias = bias is not None
    has_res = res is not None

    in_specs = [pl.BlockSpec((1, HW, C), lambda bi: (bi, 0, 0))]
    args = [x]
    if has_bias:
        in_specs.append(pl.BlockSpec((1, 1, C), lambda bi: (bi, 0, 0)))
        args.append(bias)
    in_specs += [
        pl.BlockSpec((1, C), lambda bi: (0, 0)),
        pl.BlockSpec((1, C), lambda bi: (0, 0)),
        pl.BlockSpec(cg.shape, lambda bi: (0, 0)),
        pl.BlockSpec(gc.shape, lambda bi: (0, 0)),
        pl.BlockSpec((9, C, Cout), lambda bi: (0, 0, 0)),
        pl.BlockSpec((1, Cout), lambda bi: (0, 0)),
    ]
    args += [gamma, beta, cg, gc, w_bf16, b]
    if has_res:
        in_specs.append(pl.BlockSpec((1, HW, Cout), lambda bi: (bi, 0, 0)))
        args.append(res)

    rbuf = (H + 2) * W + 2 * GUARD
    return pl.pallas_call(
        functools.partial(fused_block_kernel, H=H, W=W,
                          n_per_group=float(n_per_group),
                          has_bias=has_bias, has_res=has_res),
        out_shape=jax.ShapeDtypeStruct((B, HW, Cout), jnp.float32),
        grid=(B,),
        in_specs=in_specs,
        out_specs=pl.BlockSpec((1, HW, Cout), lambda bi: (bi, 0, 0)),
        scratch_shapes=[pltpu.VMEM((rbuf, C), jnp.float32)],
        compiler_params=pltpu.CompilerParams(
            dimension_semantics=("parallel",),
            vmem_limit_bytes=48 * 1024 * 1024),
    )(*args)


# ------------------------------ attention ---------------------------------- #

def gn_qkv_kernel(x_ref, gamma_ref, beta_ref, cg_ref, gc_ref,
                  wq_ref, wk_ref, wv_ref, q_ref, k_ref, v_ref, *, n_per_group):
    """GroupNorm -> (q, k, v) 1x1 projections (q weight pre-scaled by 1/sqrt(C))."""
    x = x_ref[0]                                          # (HW, C) f32
    norm = _group_norm(x, gamma_ref[...], beta_ref[...], cg_ref[...],
                       gc_ref[...], n_per_group)
    nb = norm.astype(jnp.bfloat16)
    q_ref[0] = jnp.dot(nb, wq_ref[...],
                       preferred_element_type=jnp.float32).astype(jnp.bfloat16)
    k_ref[0] = jnp.dot(nb, wk_ref[...],
                       preferred_element_type=jnp.float32).astype(jnp.bfloat16)
    v_ref[0] = jnp.dot(nb, wv_ref[...],
                       preferred_element_type=jnp.float32).astype(jnp.bfloat16)


def attn_kernel(q_ref, k_ref, v_ref, x_ref, wout_ref, bout_ref, o_ref):
    """One query tile: softmax(q k^T) v -> out-proj -> + residual."""
    q = q_ref[0]                                          # (TQ, C) bf16 (scaled)
    k = k_ref[0]                                          # (HW, C) bf16
    v = v_ref[0]                                          # (HW, C) bf16
    scores = jax.lax.dot_general(
        q, k, dimension_numbers=(((1,), (1,)), ((), ())),
        preferred_element_type=jnp.float32)               # (TQ, HW) f32
    m = jnp.max(scores, axis=-1, keepdims=True)
    e = jnp.exp(scores - m)
    p = e * pl.reciprocal(jnp.sum(e, axis=-1, keepdims=True), approx=True)
    out = jnp.dot(p.astype(jnp.bfloat16), v,
                  preferred_element_type=jnp.float32)     # (TQ, C) f32
    proj = jnp.dot(out.astype(jnp.bfloat16), wout_ref[...],
                   preferred_element_type=jnp.float32) + bout_ref[...]
    o_ref[0] = proj + x_ref[0]


def _pick_q_tile(hw, cap=256):
    if hw <= cap:
        return hw
    t = cap
    while t >= 8:
        if hw % t == 0 and t % 8 == 0:
            return t
        t -= 8
    return hw


def self_attention(h2, gamma, beta, cg, gc, wq, wk, wv, wout, bout, n_per_group):
    B, HW, C = h2.shape

    q, k, v = pl.pallas_call(
        functools.partial(gn_qkv_kernel, n_per_group=float(n_per_group)),
        out_shape=tuple(jax.ShapeDtypeStruct((B, HW, C), jnp.bfloat16)
                        for _ in range(3)),
        grid=(B,),
        in_specs=[
            pl.BlockSpec((1, HW, C), lambda b: (b, 0, 0)),
            pl.BlockSpec((1, C), lambda b: (0, 0)),
            pl.BlockSpec((1, C), lambda b: (0, 0)),
            pl.BlockSpec(cg.shape, lambda b: (0, 0)),
            pl.BlockSpec(gc.shape, lambda b: (0, 0)),
            pl.BlockSpec((C, C), lambda b: (0, 0)),
            pl.BlockSpec((C, C), lambda b: (0, 0)),
            pl.BlockSpec((C, C), lambda b: (0, 0)),
        ],
        out_specs=tuple(pl.BlockSpec((1, HW, C), lambda b: (b, 0, 0))
                        for _ in range(3)),
        compiler_params=pltpu.CompilerParams(
            dimension_semantics=("parallel",)),
    )(h2, gamma, beta, cg, gc, wq, wk, wv)

    # TODO(synk): switch to a fully online-softmax KV-tiled loop once the full
    #             (HW, C) K/V blocks per query tile no longer fit VMEM.
    TQ = _pick_q_tile(HW)
    return pl.pallas_call(
        attn_kernel,
        out_shape=jax.ShapeDtypeStruct((B, HW, C), jnp.float32),
        grid=(B, HW // TQ),
        in_specs=[
            pl.BlockSpec((1, TQ, C), lambda b, i: (b, i, 0)),
            pl.BlockSpec((1, HW, C), lambda b, i: (b, 0, 0)),
            pl.BlockSpec((1, HW, C), lambda b, i: (b, 0, 0)),
            pl.BlockSpec((1, TQ, C), lambda b, i: (b, i, 0)),
            pl.BlockSpec((C, C), lambda b, i: (0, 0)),
            pl.BlockSpec((1, C), lambda b, i: (0, 0)),
        ],
        out_specs=pl.BlockSpec((1, TQ, C), lambda b, i: (b, i, 0)),
        compiler_params=pltpu.CompilerParams(
            dimension_semantics=("parallel", "parallel"),
            vmem_limit_bytes=48 * 1024 * 1024),
    )(q, k, v, h2, wout, bout)


# ------------------------- module forward (glue) --------------------------- #

def resnet_block_with_attn(x_nchw, time_emb, params, *, norm_groups,
                           with_attn=True):
    B, C, H, W = x_nchw.shape
    HW = H * W
    G = norm_groups
    n_per_group = float(HW * (C // G))
    gid = jnp.arange(C) // (C // G)
    cg = (gid[:, None] == jnp.arange(G)[None, :]).astype(jnp.float32)   # (C, G)
    gc = cg.T                                                           # (G, C)

    # NCHW -> (B, HW, C)
    x = jnp.transpose(x_nchw, (0, 2, 3, 1)).reshape(B, HW, C)

    conv1_w = params['conv1_w'].astype(jnp.bfloat16)
    conv2_w = params['conv2_w'].astype(jnp.bfloat16)

    # Block1: GN -> Swish -> Conv3x3 (fused; no channel bias, no residual)
    h1 = fused_gn_swish_conv(x, params['gn1_gamma'], params['gn1_beta'],
                             cg, gc, conv1_w, params['conv1_b'], H, W,
                             n_per_group=n_per_group)

    # timestep_func (Swish -> Linear) in plain JAX: a few-kFLOP matmul,
    # launching a pallas_call would be pure overhead.
    t = time_emb
    temb = jnp.dot(t * jax.nn.sigmoid(t), params['temb_w']) + params['temb_b']

    # Block2: (+temb bias) -> GN -> Swish -> Conv3x3 -> + x  (fused)
    h2 = fused_gn_swish_conv(h1, params['gn2_gamma'], params['gn2_beta'],
                             cg, gc, conv2_w, params['conv2_b'], H, W,
                             n_per_group=n_per_group,
                             bias=temb.reshape(B, 1, C), res=x)

    out = h2
    if with_attn:
        inv_sqrt_c = 1.0 / math.sqrt(C)
        wq = (params['attn_wq'] * inv_sqrt_c).astype(jnp.bfloat16)
        wk = params['attn_wk'].astype(jnp.bfloat16)
        wv = params['attn_wv'].astype(jnp.bfloat16)
        wout = params['attn_wout'].astype(jnp.bfloat16)
        out = self_attention(h2, params['attn_gn_gamma'],
                             params['attn_gn_beta'], cg, gc,
                             wq, wk, wv, wout, params['attn_bout'],
                             n_per_group)

    # (B, HW, C) -> NCHW
    return out.reshape(B, H, W, C).transpose(0, 3, 1, 2)


def init_params(key, C, T):
    ks = jax.random.split(key, 17)

    def n(k, shape, scale=0.1):
        return scale * jax.random.normal(k, shape, jnp.float32)

    return {
        'gn1_gamma': 1.0 + n(ks[0], (1, C)),
        'gn1_beta': n(ks[1], (1, C)),
        'conv1_w': n(ks[2], (9, C, C)),       # tap (dy+1)*3+(dx+1), (Cin, Cout)
        'conv1_b': n(ks[3], (1, C)),
        'temb_w': n(ks[4], (T, C)),           # Linear weight, transposed
        'temb_b': n(ks[5], (1, C)),
        'gn2_gamma': 1.0 + n(ks[6], (1, C)),
        'gn2_beta': n(ks[7], (1, C)),
        'conv2_w': n(ks[8], (9, C, C)),
        'conv2_b': n(ks[9], (1, C)),
        'attn_gn_gamma': 1.0 + n(ks[10], (1, C)),
        'attn_gn_beta': n(ks[11], (1, C)),
        'attn_wq': n(ks[12], (C, C)),         # 1x1 convs (no bias), transposed
        'attn_wk': n(ks[13], (C, C)),
        'attn_wv': n(ks[14], (C, C)),
        'attn_wout': n(ks[15], (C, C)),       # 1x1 conv, transposed
        'attn_bout': n(ks[16], (1, C)),
    }


if __name__ == "__main__":
    B, C, H, W = 2, 32, 8, 8
    T = 16                 # timestep_level_emb_dim
    norm_groups = 8        # must divide C

    key = jax.random.PRNGKey(0)
    kx, kt, kp = jax.random.split(key, 3)
    x = jax.random.normal(kx, (B, C, H, W), jnp.float32)
    time_emb = jax.random.normal(kt, (B, T), jnp.float32)
    params = init_params(kp, C, T)

    out = resnet_block_with_attn(x, time_emb, params,
                                 norm_groups=norm_groups, with_attn=True)
    out = jax.block_until_ready(out)
    assert out.shape == (B, C, H, W)
    assert bool(jnp.all(jnp.isfinite(out)))
    print("KERNEL_OK")
</pallas_src>

<mosaic_0001>
module attributes {stable_mosaic.version = 11 : i64} {
  func.func @fused_block_kernel(%arg0: i32, %arg1: memref<1x64x32xf32, #tpu.memory_space<vmem>>, %arg2: memref<1x32xf32, #tpu.memory_space<vmem>>, %arg3: memref<1x32xf32, #tpu.memory_space<vmem>>, %arg4: memref<32x8xf32, #tpu.memory_space<vmem>>, %arg5: memref<8x32xf32, #tpu.memory_space<vmem>>, %arg6: memref<9x32x32xbf16, #tpu.memory_space<vmem>>, %arg7: memref<1x32xf32, #tpu.memory_space<vmem>>, %arg8: memref<1x64x32xf32, #tpu.memory_space<vmem>>, %arg9: memref<96x32xf32, #tpu.memory_space<vmem>>) attributes {dimension_semantics = [#tpu.dimension_semantics<parallel>], iteration_bounds = array<i64: 2>, scalar_prefetch = 0 : i64, scratch_operands = 1 : i64, tpu.core_type = #tpu.core_type<tc>, window_params = [{transform_indices = @transform_0, window_bounds = array<i64: 1, 64, 32>}, {pipeline_mode = #tpu.pipeline_mode<synchronous>, transform_indices = @transform_1, window_bounds = array<i64: 1, 32>}, {pipeline_mode = #tpu.pipeline_mode<synchronous>, transform_indices = @transform_2, window_bounds = array<i64: 1, 32>}, {pipeline_mode = #tpu.pipeline_mode<synchronous>, transform_indices = @transform_3, window_bounds = array<i64: 32, 8>}, {pipeline_mode = #tpu.pipeline_mode<synchronous>, transform_indices = @transform_4, window_bounds = array<i64: 8, 32>}, {pipeline_mode = #tpu.pipeline_mode<synchronous>, transform_indices = @transform_5, window_bounds = array<i64: 9, 32, 32>}, {pipeline_mode = #tpu.pipeline_mode<synchronous>, transform_indices = @transform_6, window_bounds = array<i64: 1, 32>}, {transform_indices = @transform_7, window_bounds = array<i64: 1, 64, 32>}]} {
    %c0 = arith.constant 0 : index
    %c0_0 = arith.constant 0 : index
    %c0_1 = arith.constant 0 : index
    %0 = vector.load %arg1[%c0, %c0_0, %c0_1] : memref<1x64x32xf32, #tpu.memory_space<vmem>>, vector<1x64x32xf32>
    %1 = vector.shape_cast %0 : vector<1x64x32xf32> to vector<64x32xf32>
    %c0_2 = arith.constant 0 : index
    %c0_3 = arith.constant 0 : index
    %2 = vector.load %arg2[%c0_2, %c0_3] : memref<1x32xf32, #tpu.memory_space<vmem>>, vector<1x32xf32>
    %c0_4 = arith.constant 0 : index
    %c0_5 = arith.constant 0 : index
    %3 = vector.load %arg3[%c0_4, %c0_5] : memref<1x32xf32, #tpu.memory_space<vmem>>, vector<1x32xf32>
    %c0_6 = arith.constant 0 : index
    %c0_7 = arith.constant 0 : index
    %4 = vector.load %arg4[%c0_6, %c0_7] : memref<32x8xf32, #tpu.memory_space<vmem>>, vector<32x8xf32>
    %c0_8 = arith.constant 0 : index
    %c0_9 = arith.constant 0 : index
    %5 = vector.load %arg5[%c0_8, %c0_9] : memref<8x32xf32, #tpu.memory_space<vmem>>, vector<8x32xf32>
    %cst = arith.constant dense<0.000000e+00> : vector<32xf32>
    %6 = vector.multi_reduction <add>, %1, %cst [0] : vector<64x32xf32> to vector<32xf32>
    %7 = vector.shape_cast %6 : vector<32xf32> to vector<1x32xf32>
    %cst_10 = arith.constant dense<0.000000e+00> : vector<1x8xf32>
    %8 = tpu.matmul %7, %4, %cst_10 {dimension_numbers = #tpu.dot_dimension_numbers<[1], [0], [0], [1], [0, 0, 1, 1], [], []>} : vector<1x32xf32>, vector<32x8xf32>, vector<1x8xf32> -> vector<1x8xf32>
    %cst_11 = arith.constant 2.560000e+02 : f32
    %9 = vector.broadcast %cst_11 : f32 to vector<1x8xf32>
    %10 = arith.divf %8, %9 : vector<1x8xf32>
    %cst_12 = arith.constant dense<0.000000e+00> : vector<1x32xf32>
    %11 = tpu.matmul %10, %5, %cst_12 {dimension_numbers = #tpu.dot_dimension_numbers<[1], [0], [0], [1], [0, 0, 1, 1], [], []>} : vector<1x8xf32>, vector<8x32xf32>, vector<1x32xf32> -> vector<1x32xf32>
    %12 = vector.broadcast %11 : vector<1x32xf32> to vector<64x32xf32>
    %13 = arith.subf %1, %12 : vector<64x32xf32>
    %14 = arith.mulf %13, %13 : vector<64x32xf32>
    %cst_13 = arith.constant dense<0.000000e+00> : vector<32xf32>
    %15 = vector.multi_reduction <add>, %14, %cst_13 [0] : vector<64x32xf32> to vector<32xf32>
    %16 = vector.shape_cast %15 : vector<32xf32> to vector<1x32xf32>
    %cst_14 = arith.constant dense<0.000000e+00> : vector<1x8xf32>
    %17 = tpu.matmul %16, %4, %cst_14 {dimension_numbers = #tpu.dot_dimension_numbers<[1], [0], [0], [1], [0, 0, 1, 1], [], []>} : vector<1x32xf32>, vector<32x8xf32>, vector<1x8xf32> -> vector<1x8xf32>
    %cst_15 = arith.constant 2.560000e+02 : f32
    %18 = vector.broadcast %cst_15 : f32 to vector<1x8xf32>
    %19 = arith.divf %17, %18 : vector<1x8xf32>
    %cst_16 = arith.constant 9.99999974E-6 : f32
    %20 = vector.broadcast %cst_16 : f32 to vector<1x8xf32>
    %21 = arith.addf %19, %20 : vector<1x8xf32>
    %22 = math.rsqrt %21 : vector<1x8xf32>
    %cst_17 = arith.constant dense<0.000000e+00> : vector<1x32xf32>
    %23 = tpu.matmul %22, %5, %cst_17 {dimension_numbers = #tpu.dot_dimension_numbers<[1], [0], [0], [1], [0, 0, 1, 1], [], []>} : vector<1x8xf32>, vector<8x32xf32>, vector<1x32xf32> -> vector<1x32xf32>
    %24 = arith.mulf %23, %2 : vector<1x32xf32>
    %25 = vector.broadcast %24 : vector<1x32xf32> to vector<64x32xf32>
    %26 = arith.mulf %13, %25 : vector<64x32xf32>
    %27 = vector.broadcast %3 : vector<1x32xf32> to vector<64x32xf32>
    %28 = arith.addf %26, %27 : vector<64x32xf32>
    %29 = arith.negf %28 : vector<64x32xf32>
    %30 = math.exp %29 : vector<64x32xf32>
    %cst_18 = arith.constant 1.000000e+00 : f32
    %31 = vector.broadcast %cst_18 : f32 to vector<64x32xf32>
    %32 = arith.addf %31, %30 : vector<64x32xf32>
    %33 = arith.divf %31, %32 : vector<64x32xf32>
    %34 = arith.mulf %28, %33 : vector<64x32xf32>
    %cst_19 = arith.constant 0.000000e+00 : f32
    %35 = vector.broadcast %cst_19 : f32 to vector<96x32xf32>
    %c0_20 = arith.constant 0 : index
    %c0_21 = arith.constant 0 : index
    %36 = vector.load %arg9[%c0_20, %c0_21] : memref<96x32xf32, #tpu.memory_space<vmem>>, vector<96x32xf32>
    tpu.vector_store %arg9[%c0_20, %c0_21], %35 {strides = array<i32>} : memref<96x32xf32, #tpu.memory_space<vmem>>, vector<96x32xf32>,
    %c16 = arith.constant 16 : index
    %c0_22 = arith.constant 0 : index
    %37 = vector.load %arg9[%c16, %c0_22] : memref<96x32xf32, #tpu.memory_space<vmem>>, vector<64x32xf32>
    tpu.vector_store %arg9[%c16, %c0_22], %34 {strides = array<i32>} : memref<96x32xf32, #tpu.memory_space<vmem>>, vector<64x32xf32>,
    %c0_23 = arith.constant 0 : index
    %c0_24 = arith.constant 0 : index
    %38 = vector.load %arg9[%c0_23, %c0_24] : memref<96x32xf32, #tpu.memory_space<vmem>>, vector<96x32xf32>
    %39 = tpu.iota {dimensions = array<i32: 0>} : vector<96x1xi32>
    %c0_i32 = arith.constant 0 : i32
    %40 = vector.broadcast %c0_i32 : i32 to vector<96x1xi32>
    %41 = arith.addi %39, %40 : vector<96x1xi32>
    %c8_i32 = arith.constant 8 : i32
    %c0_i32_25 = arith.constant 0 : i32
    %42 = arith.cmpi eq, %c8_i32, %c0_i32_25 : i32
    %c1_i32 = arith.constant 1 : i32
    %43 = arith.select %42, %c1_i32, %c8_i32 : i32
    %44 = vector.broadcast %43 : i32 to vector<96x1xi32>
    %45 = arith.remsi %41, %44 : vector<96x1xi32>
    %c0_i32_26 = arith.constant 0 : i32
    %46 = vector.broadcast %c0_i32_26 : i32 to vector<96x1xi32>
    %47 = arith.cmpi ne, %45, %46 : vector<96x1xi32>
    %c0_i32_27 = arith.constant 0 : i32
    %48 = vector.broadcast %c0_i32_27 : i32 to vector<96x1xi32>
    %49 = arith.cmpi slt, %45, %48 : vector<96x1xi32>
    %c0_i32_28 = arith.constant 0 : i32
    %50 = arith.cmpi slt, %43, %c0_i32_28 : i32
    %51 = vector.broadcast %50 : i1 to vector<96x1xi1>
    %52 = vector.broadcast %51 : vector<96x1xi1> to vector<96x1xi1>
    %53 = arith.xori %49, %52 : vector<96x1xi1>
    %54 = arith.andi %53, %47 : vector<96x1xi1>
    %55 = vector.broadcast %43 : i32 to vector<96x1xi32>
    %56 = arith.addi %45, %55 : vector<96x1xi32>
    %57 = arith.select %54, %56, %45 : vector<96x1xi1>, vector<96x1xi32>
    %c0_29 = arith.constant 0 : index
    %c0_30 = arith.constant 0 : index
    %c0_31 = arith.constant 0 : index
    %58 = vector.load %arg6[%c0_29, %c0_30, %c0_31] : memref<9x32x32xbf16, #tpu.memory_space<vmem>>, vector<9x32x32xbf16>
    %cst_32 = arith.constant 0.000000e+00 : f32
    %59 = vector.broadcast %cst_32 : f32 to vector<64x32xf32>
    %c7_i32 = arith.constant 7 : i32
    %60 = vector.broadcast %c7_i32 : i32 to vector<96x1xi32>
    %61 = arith.cmpi ne, %57, %60 : vector<96x1xi32>
    %cst_33 = arith.constant 0.000000e+00 : f32
    %62 = vector.shape_cast %61 : vector<96x1xi1> to vector<96x1xi1>
    %63 = vector.broadcast %62 : vector<96x1xi1> to vector<96x32xi1>
    %64 = vector.broadcast %cst_33 : f32 to vector<96x32xf32>
    %65 = arith.select %63, %38, %64 : vector<96x32xi1>, vector<96x32xf32>
    %66 = vector.extract_strided_slice %65 {offsets = [7, 0], sizes = [64, 32], strides = [1, 1]} : vector<96x32xf32> to vector<64x32xf32>
    %67 = arith.truncf %66 : vector<64x32xf32> to vector<64x32xbf16>
    %68 = vector.extract_strided_slice %58 {offsets = [0, 0, 0], sizes = [1, 32, 32], strides = [1, 1, 1]} : vector<9x32x32xbf16> to vector<1x32x32xbf16>
    %69 = vector.shape_cast %68 : vector<1x32x32xbf16> to vector<32x32xbf16>
    %cst_34 = arith.constant dense<0.000000e+00> : vector<64x32xf32>
    %70 = tpu.matmul %67, %69, %cst_34 {dimension_numbers = #tpu.dot_dimension_numbers<[1], [0], [0], [1], [0, 0, 1, 1], [], []>} : vector<64x32xbf16>, vector<32x32xbf16>, vector<64x32xf32> -> vector<64x32xf32>
    %71 = arith.addf %59, %70 : vector<64x32xf32>
    %72 = vector.extract_strided_slice %65 {offsets = [15, 0], sizes = [64, 32], strides = [1, 1]} : vector<96x32xf32> to vector<64x32xf32>
    %73 = arith.truncf %72 : vector<64x32xf32> to vector<64x32xbf16>
    %74 = vector.extract_strided_slice %58 {offsets = [3, 0, 0], sizes = [1, 32, 32], strides = [1, 1, 1]} : vector<9x32x32xbf16> to vector<1x32x32xbf16>
    %75 = vector.shape_cast %74 : vector<1x32x32xbf16> to vector<32x32xbf16>
    %cst_35 = arith.constant dense<0.000000e+00> : vector<64x32xf32>
    %76 = tpu.matmul %73, %75, %cst_35 {dimension_numbers = #tpu.dot_dimension_numbers<[1], [0], [0], [1], [0, 0, 1, 1], [], []>} : vector<64x32xbf16>, vector<32x32xbf16>, vector<64x32xf32> -> vector<64x32xf32>
    %77 = arith.addf %71, %76 : vector<64x32xf32>
    %78 = vector.extract_strided_slice %65 {offsets = [23, 0], sizes = [64, 32], strides = [1, 1]} : vector<96x32xf32> to vector<64x32xf32>
    %79 = arith.truncf %78 : vector<64x32xf32> to vector<64x32xbf16>
    %80 = vector.extract_strided_slice %58 {offsets = [6, 0, 0], sizes = [1, 32, 32], strides = [1, 1, 1]} : vector<9x32x32xbf16> to vector<1x32x32xbf16>
    %81 = vector.shape_cast %80 : vector<1x32x32xbf16> to vector<32x32xbf16>
    %cst_36 = arith.constant dense<0.000000e+00> : vector<64x32xf32>
    %82 = tpu.matmul %79, %81, %cst_36 {dimension_numbers = #tpu.dot_dimension_numbers<[1], [0], [0], [1], [0, 0, 1, 1], [], []>} : vector<64x32xbf16>, vector<32x32xbf16>, vector<64x32xf32> -> vector<64x32xf32>
    %83 = arith.addf %77, %82 : vector<64x32xf32>
    %84 = vector.extract_strided_slice %38 {offsets = [8, 0], sizes = [64, 32], strides = [1, 1]} : vector<96x32xf32> to vector<64x32xf32>
    %85 = arith.truncf %84 : vector<64x32xf32> to vector<64x32xbf16>
    %86 = vector.extract_strided_slice %58 {offsets = [1, 0, 0], sizes = [1, 32, 32], strides = [1, 1, 1]} : vector<9x32x32xbf16> to vector<1x32x32xbf16>
    %87 = vector.shape_cast %86 : vector<1x32x32xbf16> to vector<32x32xbf16>
    %cst_37 = arith.constant dense<0.000000e+00> : vector<64x32xf32>
    %88 = tpu.matmul %85, %87, %cst_37 {dimension_numbers = #tpu.dot_dimension_numbers<[1], [0], [0], [1], [0, 0, 1, 1], [], []>} : vector<64x32xbf16>, vector<32x32xbf16>, vector<64x32xf32> -> vector<64x32xf32>
    %89 = arith.addf %83, %88 : vector<64x32xf32>
    %90 = vector.extract_strided_slice %38 {offsets = [16, 0], sizes = [64, 32], strides = [1, 1]} : vector<96x32xf32> to vector<64x32xf32>
    %91 = arith.truncf %90 : vector<64x32xf32> to vector<64x32xbf16>
    %92 = vector.extract_strided_slice %58 {offsets = [4, 0, 0], sizes = [1, 32, 32], strides = [1, 1, 1]} : vector<9x32x32xbf16> to vector<1x32x32xbf16>
    %93 = vector.shape_cast %92 : vector<1x32x32xbf16> to vector<32x32xbf16>
    %cst_38 = arith.constant dense<0.000000e+00> : vector<64x32xf32>
    %94 = tpu.matmul %91, %93, %cst_38 {dimension_numbers = #tpu.dot_dimension_numbers<[1], [0], [0], [1], [0, 0, 1, 1], [], []>} : vector<64x32xbf16>, vector<32x32xbf16>, vector<64x32xf32> -> vector<64x32xf32>
    %95 = arith.addf %89, %94 : vector<64x32xf32>
    %96 = vector.extract_strided_slice %38 {offsets = [24, 0], sizes = [64, 32], strides = [1, 1]} : vector<96x32xf32> to vector<64x32xf32>
    %97 = arith.truncf %96 : vector<64x32xf32> to vector<64x32xbf16>
    %98 = vector.extract_strided_slice %58 {offsets = [7, 0, 0], sizes = [1, 32, 32], strides = [1, 1, 1]} : vector<9x32x32xbf16> to vector<1x32x32xbf16>
    %99 = vector.shape_cast %98 : vector<1x32x32xbf16> to vector<32x32xbf16>
    %cst_39 = arith.constant dense<0.000000e+00> : vector<64x32xf32>
    %100 = tpu.matmul %97, %99, %cst_39 {dimension_numbers = #tpu.dot_dimension_numbers<[1], [0], [0], [1], [0, 0, 1, 1], [], []>} : vector<64x32xbf16>, vector<32x32xbf16>, vector<64x32xf32> -> vector<64x32xf32>
    %101 = arith.addf %95, %100 : vector<64x32xf32>
    %c0_i32_40 = arith.constant 0 : i32
    %102 = vector.broadcast %c0_i32_40 : i32 to vector<96x1xi32>
    %103 = arith.cmpi ne, %57, %102 : vector<96x1xi32>
    %cst_41 = arith.constant 0.000000e+00 : f32
    %104 = vector.shape_cast %103 : vector<96x1xi1> to vector<96x1xi1>
    %105 = vector.broadcast %104 : vector<96x1xi1> to vector<96x32xi1>
    %106 = vector.broadcast %cst_41 : f32 to vector<96x32xf32>
    %107 = arith.select %105, %38, %106 : vector<96x32xi1>, vector<96x32xf32>
    %108 = vector.extract_strided_slice %107 {offsets = [9, 0], sizes = [64, 32], strides = [1, 1]} : vector<96x32xf32> to vector<64x32xf32>
    %109 = arith.truncf %108 : vector<64x32xf32> to vector<64x32xbf16>
    %110 = vector.extract_strided_slice %58 {offsets = [2, 0, 0], sizes = [1, 32, 32], strides = [1, 1, 1]} : vector<9x32x32xbf16> to vector<1x32x32xbf16>
    %111 = vector.shape_cast %110 : vector<1x32x32xbf16> to vector<32x32xbf16>
    %cst_42 = arith.constant dense<0.000000e+00> : vector<64x32xf32>
    %112 = tpu.matmul %109, %111, %cst_42 {dimension_numbers = #tpu.dot_dimension_numbers<[1], [0], [0], [1], [0, 0, 1, 1], [], []>} : vector<64x32xbf16>, vector<32x32xbf16>, vector<64x32xf32> -> vector<64x32xf32>
    %113 = arith.addf %101, %112 : vector<64x32xf32>
    %114 = vector.extract_strided_slice %107 {offsets = [17, 0], sizes = [64, 32], strides = [1, 1]} : vector<96x32xf32> to vector<64x32xf32>
    %115 = arith.truncf %114 : vector<64x32xf32> to vector<64x32xbf16>
    %116 = vector.extract_strided_slice %58 {offsets = [5, 0, 0], sizes = [1, 32, 32], strides = [1, 1, 1]} : vector<9x32x32xbf16> to vector<1x32x32xbf16>
    %117 = vector.shape_cast %116 : vector<1x32x32xbf16> to vector<32x32xbf16>
    %cst_43 = arith.constant dense<0.000000e+00> : vector<64x32xf32>
    %118 = tpu.matmul %115, %117, %cst_43 {dimension_numbers = #tpu.dot_dimension_numbers<[1], [0], [0], [1], [0, 0, 1, 1], [], []>} : vector<64x32xbf16>, vector<32x32xbf16>, vector<64x32xf32> -> vector<64x32xf32>
    %119 = arith.addf %113, %118 : vector<64x32xf32>
    %120 = vector.extract_strided_slice %107 {offsets = [25, 0], sizes = [64, 32], strides = [1, 1]} : vector<96x32xf32> to vector<64x32xf32>
    %121 = arith.truncf %120 : vector<64x32xf32> to vector<64x32xbf16>
    %122 = vector.extract_strided_slice %58 {offsets = [8, 0, 0], sizes = [1, 32, 32], strides = [1, 1, 1]} : vector<9x32x32xbf16> to vector<1x32x32xbf16>
    %123 = vector.shape_cast %122 : vector<1x32x32xbf16> to vector<32x32xbf16>
    %cst_44 = arith.constant dense<0.000000e+00> : vector<64x32xf32>
    %124 = tpu.matmul %121, %123, %cst_44 {dimension_numbers = #tpu.dot_dimension_numbers<[1], [0], [0], [1], [0, 0, 1, 1], [], []>} : vector<64x32xbf16>, vector<32x32xbf16>, vector<64x32xf32> -> vector<64x32xf32>
    %125 = arith.addf %119, %124 : vector<64x32xf32>
    %c0_45 = arith.constant 0 : index
    %c0_46 = arith.constant 0 : index
    %126 = vector.load %arg7[%c0_45, %c0_46] : memref<1x32xf32, #tpu.memory_space<vmem>>, vector<1x32xf32>
    %127 = vector.broadcast %126 : vector<1x32xf32> to vector<64x32xf32>
    %128 = arith.addf %125, %127 : vector<64x32xf32>
    %c0_47 = arith.constant 0 : index
    %c0_48 = arith.constant 0 : index
    %c0_49 = arith.constant 0 : index
    %129 = vector.load %arg8[%c0_47, %c0_48, %c0_49] : memref<1x64x32xf32, #tpu.memory_space<vmem>>, vector<1x64x32xf32>
    %130 = vector.shape_cast %129 : vector<1x64x32xf32> to vector<64x32xf32>
    %131 = vector.shape_cast %128 : vector<64x32xf32> to vector<1x64x32xf32>
    tpu.vector_store %arg8[%c0_47, %c0_48, %c0_49], %131 {strides = array<i32>} : memref<1x64x32xf32, #tpu.memory_space<vmem>>, vector<1x64x32xf32>,
    return
  }
  func.func @transform_0(%arg0: i32) -> (i32, i32, i32) {
    %c0_i32 = arith.constant 0 : i32
    %c0_i32_0 = arith.constant 0 : i32
    %c0_i32_1 = arith.constant 0 : i32
    return %arg0, %c0_i32, %c0_i32_0 : i32, i32, i32
  }
  func.func @transform_1(%arg0: i32) -> (i32, i32) {
    %c0_i32 = arith.constant 0 : i32
    %c0_i32_0 = arith.constant 0 : i32
    %c0_i32_1 = arith.constant 0 : i32
    return %c0_i32, %c0_i32_0 : i32, i32
  }
  func.func @transform_2(%arg0: i32) -> (i32, i32) {
    %c0_i32 = arith.constant 0 : i32
    %c0_i32_0 = arith.constant 0 : i32
    %c0_i32_1 = arith.constant 0 : i32
    return %c0_i32, %c0_i32_0 : i32, i32
  }
  func.func @transform_3(%arg0: i32) -> (i32, i32) {
    %c0_i32 = arith.constant 0 : i32
    %c0_i32_0 = arith.constant 0 : i32
    %c0_i32_1 = arith.constant 0 : i32
    return %c0_i32, %c0_i32_0 : i32, i32
  }
  func.func @transform_4(%arg0: i32) -> (i32, i32) {
    %c0_i32 = arith.constant 0 : i32
    %c0_i32_0 = arith.constant 0 : i32
    %c0_i32_1 = arith.constant 0 : i32
    return %c0_i32, %c0_i32_0 : i32, i32
  }
  func.func @transform_5(%arg0: i32) -> (i32, i32, i32) {
    %c0_i32 = arith.constant 0 : i32
    %c0_i32_0 = arith.constant 0 : i32
    %c0_i32_1 = arith.constant 0 : i32
    %c0_i32_2 = arith.constant 0 : i32
    return %c0_i32, %c0_i32_0, %c0_i32_1 : i32, i32, i32
  }
  func.func @transform_6(%arg0: i32) -> (i32, i32) {
    %c0_i32 = arith.constant 0 : i32
    %c0_i32_0 = arith.constant 0 : i32
    %c0_i32_1 = arith.constant 0 : i32
    return %c0_i32, %c0_i32_0 : i32, i32
  }
  func.func @transform_7(%arg0: i32) -> (i32, i32, i32) {
    %c0_i32 = arith.constant 0 : i32
    %c0_i32_0 = arith.constant 0 : i32
    %c0_i32_1 = arith.constant 0 : i32
    return %arg0, %c0_i32, %c0_i32_0 : i32, i32, i32
  }
}

</mosaic_0001>

<bundles_post_ra>
// kernel: tpu_custom_call.1
= control target key start
LH: loop header
LB: loop body
LE: loop exit
PB: predicated region body
PF: predicated region fallthrough
CT: control target
= control target key end

     0   :  { %s2030_s24 = smov 0   ;;  %s2907_s0 = inlined_call_operand.vmem [shape: f32[2,64,32], index: 0, kind: input, shape index: {}]   ;;  %s2908_s1 = inlined_call_operand.vmem [shape: f32[1,32], index: 1, kind: input, shape index: {}]   ;;  %s2909_s2 = inlined_call_operand.vmem [shape: f32[1,32], index: 2, kind: input, shape index: {}]   ;;  %s2910_s3 = inlined_call_operand.vmem [shape: f32[32,8], index: 3, kind: input, shape index: {}]   ;;  %s2911_s4 = inlined_call_operand.vmem [shape: f32[8,32], index: 4, kind: input, shape index: {}]   ;;  %s2912_s5 = inlined_call_operand.vmem [shape: bf16[9,32,32], index: 5, kind: input, shape index: {}]   ;;  %s2913_s6 = inlined_call_operand.vmem [shape: f32[1,32], index: 6, kind: input, shape index: {}]   ;;  %s2914_s7 = inlined_call_operand.vmem [shape: f32[2,64,32], index: 7, kind: output, shape index: {}]  }
   0x1 LB: > { %s1775_s25 = sadd.s32 4294967295, %s1986_s24   ;;  %p1779_p0 = scmp.ge.s32.totalorder %s1986_s24, 1  ;;  %s1986_s24 = sphi %s2030_s24, %s17_s24  }
   0x2   : > { %p237_p1 = scmp.lt.s32.totalorder %s1986_s24, 3 }
   0x4   : > { %p238_p2 = pnand %p1779_p0, %p237_p1 }
   0x5   : > { %p269_p3 = scmp.lt.s32.totalorder (!%p238_p2), %s1775_s25, 1 }
   0x6   : > { %241 = sbr.rel (%p238_p2) target bundleno = 972 (0x3cc), region = 48 }
   0xb   : > { %v293_v0 = vld [vmem:[%s2910_s3 + $0x18] sm:$0xff]  ;;  %v292_v1 = vld [vmem:[%s2910_s3 + $0x10] sm:$0xff]  ;;  %v291_v2 = vld [vmem:[%s2910_s3 + $0x8] sm:$0xff]  ;;  %s2984_s25 = smov (!%p269_p3, %s1775_s25), 1  ;;  %vm295_vm0 = vcmask 261120   ;;  %v1988_v34 = vmov 256.0  }
   0xc   : > { %332 = vmatpush.msra.mxu0 %v293_v0  ;;  %425 = vmatpush.msra.mxu2 %v293_v0  ;;  %v290_v3 = vld [vmem:[%s2910_s3] sm:$0xff]  ;;  %s1906_s11 = sshll.u32 %s2984_s25, 6  ;;  %1944 = vrcp.f32 %v1988_v34  ;;  %vm348_vm2 = vcmask 64512  }
   0xd   : > { %s273_s14 = scalar_lea.vmem %s2907_s0, %s1906_s11  ;;  %v294_v33 = vld [vmem:[%s2911_s4] sm:$0xff]  ;;  %s2857_s21 = scalar_lea.vmem %s2914_s7, %s1906_s11 }
   0xe   : > { %333 = vmatpush.msra.mxu0 %v292_v1  ;;  %426 = vmatpush.msra.mxu2 %v292_v1  ;;  %v280_v4 = vld [vmem:[%s273_s14] sm:$0xff]  ;;  %v281_v5 = vld [vmem:[%s273_s14 + $0x8] sm:$0xff]  ;;  %v282_v6 = vld [vmem:[%s273_s14 + $0x10] sm:$0xff] }
   0xf   : > { %v283_v7 = vld [vmem:[%s273_s14 + $0x18] sm:$0xff]  ;;  %v296_v8 = vsel %vm295_vm0, %v280_v4, 0.0  ;;  %v297_v9 = vsel %vm295_vm0, %v281_v5, 0.0  ;;  %v299_v10 = vsel %vm295_vm0, %v282_v6, 0.0  ;;  %v284_v11 = vld [vmem:[%s273_s14 + $0x20] sm:$0xff]  ;;  %v285_v14 = vld [vmem:[%s273_s14 + $0x28] sm:$0xff]  ;;  %367 = vmatpush.msra.mxu1 %v294_v33  ;;  %463 = vmatpush.msra.mxu3 %v294_v33 }
  0x10   : > { %334 = vmatpush.msra.mxu0 %v291_v2  ;;  %427 = vmatpush.msra.mxu2 %v291_v2  ;;  %v298_v12 = vadd.f32 %v297_v9, %v296_v8  ;;  %v301_v13 = vsel %vm295_vm0, %v283_v7, 0.0  ;;  %v303_v16 = vsel %vm295_vm0, %v284_v11, 0.0  ;;  %v286_v17 = vld [vmem:[%s273_s14 + $0x30] sm:$0xff]  ;;  %v305_v19 = vsel %vm295_vm0, %v285_v14, 0.0  ;;  %v287_v20 = vld [vmem:[%s273_s14 + $0x38] sm:$0xff] }
  0x11   : > { %v307_v22 = vsel %vm295_vm0, %v286_v17, 0.0  ;;  %v309_v24 = vsel %vm295_vm0, %v287_v20, 0.0 }
  0x12   : > { %335 = vmatpush.msra.mxu0 %v290_v3  ;;  %428 = vmatpush.msra.mxu2 %v290_v3  ;;  %v300_v15 = vadd.f32 %v299_v10, %v298_v12  ;;  %v1945_v35 = vpop.eup %1944 }
  0x13   : > { %v341_v36 = vmul.f32 256.0, %v1945_v35  ;;  %vm345_vm1 = vweird.f32 %v1945_v35 }
  0x14   : > { %v302_v18 = vadd.f32 %v301_v13, %v300_v15 }
  0x15   : > { %v342_v37 = vsub.f32 1.0, %v341_v36 }
  0x16   : > { %v304_v21 = vadd.f32 %v303_v16, %v302_v18 }
  0x17   : > { %v343_v38 = vmul.f32 %v1945_v35, %v342_v37 }
  0x18   : > { %v306_v23 = vadd.f32 %v305_v19, %v304_v21 }
  0x19   : > { %v344_v39 = vadd.f32 %v1945_v35, %v343_v38 }
  0x1a   : > { %v308_v25 = vadd.f32 %v307_v22, %v306_v23 }
  0x1b   : > { %v346_v40 = vsel %vm345_vm1, %v1945_v35, %v344_v39 }
  0x1c   : > { %v310_v26 = vadd.f32 %v309_v24, %v308_v25 }
  0x1e   : > { %v311_v27 = vrot.slane %v310_v26, 4 }
  0x20   : > { %v312_v28 = vadd.f32 %v311_v27, %v310_v26 }
  0x22   : > { %v313_v29 = vrot.slane %v312_v28, 2 }
  0x24   : > { %v314_v30 = vadd.f32 %v313_v29, %v312_v28  ;;  %v288_v28 = vld [vmem:[%s2908_s1] sm:$0x1] }
  0x26   : > { %v315_v31 = vrot.slane %v314_v30, 1 }
  0x28   : > { %v316_v32 = vadd.f32 %v315_v31, %v314_v30 }
  0x2a   : > { %1784 = vmatmul.msk.f32.vlgmr.msra.gmra.mxu0 %vm295_vm0, %v316_v32  ;;  %v1942_v32 = vld [vmem:[%s2909_s2] ss:$0 sm:$0xff] }
  0xa7   : > { %v337_v41 = vpop.f32.mrf.mxu0 }
  0xa8   : > { %v347_v42 = vmul.f32 %v346_v40, %v337_v41 }
  0xaa   : > { %1785 = vmatmul.msk.f32.vlgmr.msra.gmra.mxu1 %vm348_vm2, %v347_v42 }
 0x127   : > { %v369_v43 = vpop.f32.mrf.mxu1 }
 0x128   : > { %v372_v44 = vperm.slane %v369_v43, 0 }
 0x12a   : > { %v373_v45 = vsub.f32 %v280_v4, %v372_v44  ;;  %v374_v46 = vsub.f32 %v281_v5, %v372_v44  ;;  %v375_v47 = vsub.f32 %v282_v6, %v372_v44  ;;  %v376_v48 = vsub.f32 %v283_v7, %v372_v44 }
 0x12b   : > { %v377_v49 = vsub.f32 %v284_v11, %v372_v44  ;;  %v378_v53 = vsub.f32 %v285_v14, %v372_v44  ;;  %v379_v58 = vsub.f32 %v286_v17, %v372_v44  ;;  %v380_v62 = vsub.f32 %v287_v20, %v372_v44 }
 0x12c   : > { %v381_v50 = vmul.f32 %v373_v45, %v373_v45  ;;  %v382_v51 = vmul.f32 %v374_v46, %v374_v46  ;;  %v383_v52 = vmul.f32 %v375_v47, %v375_v47  ;;  %v384_v54 = vmul.f32 %v376_v48, %v376_v48 }
 0x12d   : > { %v385_v59 = vmul.f32 %v377_v49, %v377_v49  ;;  %v386_v63 = vmul.f32 %v378_v53, %v378_v53  ;;  %v387_v2 = vmul.f32 %v379_v58, %v379_v58  ;;  %v388_v5 = vmul.f32 %v380_v62, %v380_v62 }
 0x12e   : > { %v389_v55 = vsel %vm295_vm0, %v381_v50, 0.0  ;;  %v390_v56 = vsel %vm295_vm0, %v382_v51, 0.0  ;;  %v392_v60 = vsel %vm295_vm0, %v383_v52, 0.0  ;;  %v394_v0 = vsel %vm295_vm0, %v384_v54, 0.0 }
 0x12f   : > { %v391_v57 = vadd.f32 %v390_v56, %v389_v55  ;;  %v396_v3 = vsel %vm295_vm0, %v385_v59, 0.0  ;;  %v398_v6 = vsel %vm295_vm0, %v386_v63, 0.0  ;;  %v400_v8 = vsel %vm295_vm0, %v387_v2, 0.0 }
 0x130   : > { %v402_v10 = vsel %vm295_vm0, %v388_v5, 0.0 }
 0x131   : > { %v393_v61 = vadd.f32 %v392_v60, %v391_v57 }
 0x133   : > { %v395_v1 = vadd.f32 %v394_v0, %v393_v61 }
 0x135   : > { %v397_v4 = vadd.f32 %v396_v3, %v395_v1 }
 0x137   : > { %v399_v7 = vadd.f32 %v398_v6, %v397_v4 }
 0x139   : > { %v401_v9 = vadd.f32 %v400_v8, %v399_v7 }
 0x13b   : > { %v403_v11 = vadd.f32 %v402_v10, %v401_v9 }
 0x13d   : > { %v404_v12 = vrot.slane %v403_v11, 4 }
 0x13f   : > { %v405_v13 = vadd.f32 %v404_v12, %v403_v11 }
 0x141   : > { %v406_v14 = vrot.slane %v405_v13, 2 }
 0x143   : > { %v407_v15 = vadd.f32 %v406_v14, %v405_v13 }
 0x145   : > { %v408_v16 = vrot.slane %v407_v15, 1 }
 0x147   : > { %v409_v17 = vadd.f32 %v408_v16, %v407_v15 }
 0x149   : > { %1786 = vmatmul.msk.f32.vlgmr.msra.gmra.mxu2 %vm295_vm0, %v409_v17 }
 0x1cc   : > { %v430_v18 = vpop.f32.mrf.mxu2 }
 0x1cd   : > { %v433_v19 = vmul.f32 %v430_v18, %v346_v40 }
 0x1cf   : > { %v434_v20 = vadd.f32 1e-05, %v433_v19 }
 0x1d1   : > { %1946 = vrsqrt.f32 %v434_v20  ;;  %vm441_vm4 = vweird.f32 %v434_v20 }
 0x1d7   : > { %v1947_v21 = vpop.eup %1946 }
 0x1d8   : > { %v436_v22 = vmul.f32 %v1947_v21, %v434_v20  ;;  %vm442_vm3 = vweird.f32 %v1947_v21 }
 0x1d9   : > { %vm443_vm5 = vmor %vm441_vm4, %vm442_vm3 }
 0x1da   : > { %v437_v23 = vmul.f32 %v1947_v21, %v436_v22 }
 0x1dc   : > { %v438_v24 = vmul.f32 0.5, %v437_v23 }
 0x1de   : > { %v439_v25 = vsub.f32 1.5, %v438_v24 }
 0x1e0   : > { %v440_v26 = vmul.f32 %v1947_v21, %v439_v25 }
 0x1e2   : > { %v444_v27 = vsel %vm443_vm5, %v1947_v21, %v440_v26 }
 0x1e3   : > { %1787 = vmatmul.msk.f32.vlgmr.msra.gmra.mxu3 %vm348_vm2, %v444_v27 }
 0x266   : > { %v465_v29 = vpop.f32.mrf.mxu3 }
 0x267   : > { %v468_v30 = vmul.f32 %v465_v29, %v288_v28 }
 0x269   : > { %v469_v31 = vperm.slane %v468_v30, 0 }
 0x26b   : > { %v470_v33 = vmul.f32 %v469_v31, %v373_v45  ;;  %v471_v34 = vmul.f32 %v469_v31, %v374_v46  ;;  %v472_v35 = vmul.f32 %v469_v31, %v375_v47  ;;  %v473_v36 = vmul.f32 %v469_v31, %v376_v48 }
 0x26c   : > { %v474_v37 = vmul.f32 %v469_v31, %v377_v49  ;;  %v475_v38 = vmul.f32 %v469_v31, %v378_v53  ;;  %v476_v47 = vmul.f32 %v469_v31, %v379_v58  ;;  %v477_v51 = vmul.f32 %v469_v31, %v380_v62 }
 0x26d   : > { %v2087_v39 = vadd.f32 %v1942_v32, %v470_v33  ;;  %v2089_v40 = vadd.f32 %v1942_v32, %v471_v34  ;;  %v2091_v41 = vadd.f32 %v1942_v32, %v472_v35  ;;  %v2093_v42 = vadd.f32 %v1942_v32, %v473_v36 }
 0x26e   : > { %v2095_v43 = vadd.f32 %v1942_v32, %v474_v37  ;;  %v2097_v44 = vadd.f32 %v1942_v32, %v475_v38  ;;  %v2105_v53 = vadd.f32 %v1942_v32, %v476_v47  ;;  %v2107_v54 = vadd.f32 %v1942_v32, %v477_v51  ;;  %v1915_v32 = vld [vmem:[%s2912_s5 + $0x38] sm:$0xff] }
 0x26f   : > { %v1788_v50 = vmul.f32 -1.442695, %v2087_v39  ;;  %v1789_v45 = vmul.f32 -1.442695, %v2089_v40  ;;  %v1790_v46 = vmul.f32 -1.442695, %v2091_v41  ;;  %1928 = vmatpush.bf16.msrb.mxu3 %v1915_v32  ;;  %1003 = vmatpush.bf16.msrb.mxu0 %v1915_v32 }
 0x270   : > { %v1791_v48 = vmul.f32 -1.442695, %v2093_v42  ;;  %v1792_v49 = vmul.f32 -1.442695, %v2095_v43  ;;  %v1793_v52 = vmul.f32 -1.442695, %v2097_v44  ;;  %1926 = vmatpush.bf16.msrb.mxu1 %v1915_v32  ;;  %1927 = vmatpush.bf16.msrb.mxu2 %v1915_v32 }
 0x271   : > { %1948 = vpow2.f32 %v1788_v50  ;;  %v1794_v57 = vmul.f32 -1.442695, %v2105_v53  ;;  %v1795_v62 = vmul.f32 -1.442695, %v2107_v54 }
 0x272   : > { %1950 = vpow2.f32 %v1789_v45 }
 0x273   : > { %1952 = vpow2.f32 %v1790_v46  ;;  %v1914_v46 = vld [vmem:[%s2912_s5 + $0x30] sm:$0xff] }
 0x274   : > { %1954 = vpow2.f32 %v1791_v48  ;;  %1931 = vmatpush.bf16.msrb.mxu3 %v1914_v46  ;;  %1004 = vmatpush.bf16.msrb.mxu0 %v1914_v46 }
 0x275   : > { %1956 = vpow2.f32 %v1792_v49  ;;  %1929 = vmatpush.bf16.msrb.mxu1 %v1914_v46  ;;  %1930 = vmatpush.bf16.msrb.mxu2 %v1914_v46 }
 0x276   : > { %1958 = vpow2.f32 %v1793_v52 }
 0x277   : > { %v1949_v55 = vpop.eup %1948 }
 0x278   : > { %v1951_v56 = vpop.eup %1950  ;;  %v2110_v58 = vadd.f32 1.0, %v1949_v55 }
 0x279   : > { %v1953_v59 = vpop.eup %1952  ;;  %v2112_v60 = vadd.f32 1.0, %v1951_v56 }
 0x27a   : > { %v1955_v61 = vpop.eup %1954  ;;  %v2115_v63 = vadd.f32 1.0, %v1953_v59  ;;  %1960 = vrcp.f32 %v2110_v58  ;;  %v532_v8 = vand.u32 2147483648, %v2110_v58  ;;  %vm526_vm6 = vweird.f32 %v2110_v58 }
 0x27b   : > { %v1957_v0 = vpop.eup %1956  ;;  %v2118_v1 = vadd.f32 1.0, %v1955_v61  ;;  %1962 = vrcp.f32 %v2112_v60  ;;  %v547_v9 = vand.u32 2147483648, %v2112_v60  ;;  %v530_v15 = vand.u32 2147483647, %v2110_v58 }
 0x27c   : > { %v1959_v2 = vpop.eup %1958  ;;  %1964 = vpow2.f32 %v1794_v57  ;;  %v2121_v3 = vadd.f32 1.0, %v1957_v0  ;;  %v545_v17 = vand.u32 2147483647, %v2112_v60  ;;  %v2150_v21 = vor.u32 1.1754944e-38, %v532_v8  ;;  %v1911_v57 = vld [vmem:[%s2912_s5 + $0x18] sm:$0xff] }
 0x27d   : > { %1966 = vrcp.f32 %v2115_v63  ;;  %v2124_v4 = vadd.f32 1.0, %v1959_v2  ;;  %vm541_vm7 = vweird.f32 %v2112_v60  ;;  %v2153_v22 = vor.u32 1.1754944e-38, %v547_v9  ;;  %1232 = vmatpush.bf16.msra.mxu2 %v1911_v57 }
 0x27e   : > { %1968 = vpow2.f32 %v1795_v62  ;;  %v560_v29 = vand.u32 2147483647, %v2115_v63  ;;  %v562_v30 = vand.u32 2147483648, %v2115_v63  ;;  %vm2171_vm9 = vcmp.eq.f32.partialorder %v530_v15, 8.507059e+37 }
 0x27f   : > { %1970 = vrcp.f32 %v2118_v1  ;;  %vm2175_vm10 = vcmp.eq.f32.partialorder %v545_v17, 8.507059e+37  ;;  %vm556_vm11 = vweird.f32 %v2115_v63  ;;  %v575_v36 = vand.u32 2147483647, %v2118_v1 }
 0x280   : > { %v2127_v5 = vpop.eup %1960  ;;  %1972 = vrcp.f32 %v2121_v3  ;;  %v577_v37 = vand.u32 2147483648, %v2118_v1  ;;  %v592_v45 = vand.u32 2147483648, %v2121_v3  ;;  %v590_v51 = vand.u32 2147483647, %v2121_v3 }
 0x281   : > { %v2130_v6 = vpop.eup %1962  ;;  %v522_v7 = vmul.f32 %v2127_v5, %v2110_v58  ;;  %1974 = vrcp.f32 %v2124_v4  ;;  %vm527_vm8 = vweird.f32 %v2127_v5  ;;  %v563_v52 = vor.u32 1.1754944e-38, %v562_v30 }
 0x282   : > { %v1965_v10 = vpop.eup %1964  ;;  %v537_v11 = vmul.f32 %v2130_v6, %v2112_v60  ;;  %vm542_vm12 = vweird.f32 %v2130_v6  ;;  %vm571_vm13 = vweird.f32 %v2118_v1  ;;  %vm2202_vm14 = vmor %vm526_vm6, %vm527_vm8  ;;  %vm2206_vm15 = vcmp.eq.f32.partialorder %v560_v29, 8.507059e+37 }
 0x283   : > { %v2138_v12 = vpop.eup %1966  ;;  %v523_v13 = vsub.f32 1.0, %v522_v7  ;;  %v2148_v20 = vadd.f32 1.0, %v1965_v10  ;;  %v578_v61 = vor.u32 1.1754944e-38, %v577_v37  ;;  %vm586_vm1 = vweird.f32 %v2121_v3  ;;  %vm2217_vm2 = vmor %vm541_vm7, %vm542_vm12 }
 0x284   : > { %v1969_v14 = vpop.eup %1968  ;;  %v538_v16 = vsub.f32 1.0, %v537_v11  ;;  %v552_v18 = vmul.f32 %v2138_v12, %v2115_v63  ;;  %v605_v0 = vand.u32 2147483647, %v2124_v4  ;;  %vm557_vm3 = vweird.f32 %v2138_v12  ;;  %v1920_v11 = vld [vmem:[%s2912_s5 + $0x60] sm:$0xff] }
 0x285   : > { %v2146_v19 = vpop.eup %1970  ;;  %v524_v24 = vmul.f32 %v2127_v5, %v523_v13  ;;  %v2161_v28 = vadd.f32 1.0, %v1969_v14  ;;  %1976 = vrcp.f32 %v2148_v20  ;;  %v593_v2 = vor.u32 1.1754944e-38, %v592_v45 }
 0x286   : > { %v2155_v23 = vpop.eup %1972  ;;  %v539_v25 = vmul.f32 %v2130_v6, %v538_v16  ;;  %v553_v26 = vsub.f32 1.0, %v552_v18  ;;  %v567_v27 = vmul.f32 %v2146_v19, %v2118_v1  ;;  %vm601_vm4 = vweird.f32 %v2124_v4 }
 0x287   : > { %v582_v31 = vmul.f32 %v2155_v23, %v2121_v3  ;;  %v2182_v38 = vpop.eup %1974  ;;  %v525_v47 = vadd.f32 %v2127_v5, %v524_v24  ;;  %vm2230_vm5 = vcmp.eq.f32.partialorder %v575_v36, 8.507059e+37  ;;  %vm2234_vm6 = vcmp.eq.f32.partialorder %v590_v51, 8.507059e+37 }
 0x288   : > { %v568_v35 = vsub.f32 1.0, %v567_v27  ;;  %v540_v48 = vadd.f32 %v2130_v6, %v539_v25  ;;  %v554_v49 = vmul.f32 %v2138_v12, %v553_v26  ;;  %v597_v56 = vmul.f32 %v2182_v38, %v2124_v4 }
 0x289   : > { %v583_v50 = vsub.f32 1.0, %v582_v31  ;;  %v529_v8 = vsel %vm2202_vm14, %v2127_v5, %v525_v47  ;;  %1978 = vrcp.f32 %v2161_v28  ;;  %vm572_vm7 = vweird.f32 %v2146_v19  ;;  %vm2263_vm14 = vmor %vm556_vm11, %vm557_vm3 }
 0x28a   : > { %v569_v55 = vmul.f32 %v2146_v19, %v568_v35  ;;  %v598_v7 = vsub.f32 1.0, %v597_v56  ;;  %v544_v60 = vsel %vm2217_vm2, %v2130_v6, %v540_v48  ;;  %v555_v9 = vadd.f32 %v2138_v12, %v554_v49 }
 0x28b   : > { %v584_v62 = vmul.f32 %v2155_v23, %v583_v50  ;;  %v2239_v13 = vpop.eup %1976  ;;  %v607_v14 = vand.u32 2147483648, %v2124_v4  ;;  %vm587_vm8 = vweird.f32 %v2155_v23  ;;  %vm2247_vm12 = vcmp.eq.f32.partialorder %v605_v0, 8.507059e+37 }
 0x28c   : > { %v570_v5 = vadd.f32 %v2146_v19, %v569_v55  ;;  %v599_v6 = vmul.f32 %v2182_v38, %v598_v7  ;;  %v612_v17 = vmul.f32 %v2239_v13, %v2148_v20  ;;  %v534_v18 = vsel %vm2171_vm9, %v2150_v21, %v529_v8  ;;  %vm2274_vm9 = vmor %vm571_vm13, %vm572_vm7  ;;  %v1908_v8 = vld [vmem:[%s2912_s5] sm:$0xff] }
 0x28d   : > { %v585_v15 = vadd.f32 %v2155_v23, %v584_v62  ;;  %v549_v24 = vsel %vm2175_vm10, %v2153_v22, %v544_v60  ;;  %vm616_vm2 = vweird.f32 %v2148_v20  ;;  %v620_v26 = vand.u32 2147483647, %v2148_v20  ;;  %vm2285_vm11 = vmor %vm586_vm1, %vm587_vm8  ;;  %v1917_v62 = vld [vmem:[%s2912_s5 + $0x48] sm:$0xff]  ;;  %v1910_v60 = vld [vmem:[%s2912_s5 + $0x10] sm:$0xff] }
 0x28e   : > { %v559_v21 = vsel %vm2263_vm14, %v2138_v12, %v555_v9  ;;  %v600_v63 = vadd.f32 %v2182_v38, %v599_v6  ;;  %vm602_vm10 = vweird.f32 %v2182_v38  ;;  %v613_v27 = vsub.f32 1.0, %v612_v17  ;;  %1297 = vmatpush.bf16.msra.mxu1 %v1917_v62  ;;  %1233 = vmatpush.bf16.msra.mxu2 %v1910_v60 }
 0x28f   : > { %v574_v29 = vsel %vm2274_vm9, %v2146_v19, %v570_v5  ;;  %v608_v1 = vor.u32 1.1754944e-38, %v607_v14  ;;  %v622_v12 = vand.u32 2147483648, %v2148_v20  ;;  %v2290_v31 = vpop.eup %1978  ;;  %v589_v32 = vsel %vm2285_vm11, %v2155_v23, %v585_v15  ;;  %vm2303_vm1 = vmor %vm601_vm4, %vm602_vm10  ;;  %v1909_v20 = vld [vmem:[%s2912_s5 + $0x8] sm:$0xff] }
 0x290   : > { %v614_v33 = vmul.f32 %v2239_v13, %v613_v27  ;;  %vm617_vm13 = vweird.f32 %v2239_v13  ;;  %v1989_v19 = vmov 0.0   ;;  %v681_v3 = vlaneseq  ;;  %1100 = vmatpush.bf16.msra.mxu3 %v1909_v20 }
 0x291   : > { %651 = vst.msk [vmem:[#allocation2 + $0x10] sm:$0xff] %vm295_vm0, %v1989_v19  ;;  %v564_v34 = vsel %vm2206_vm15, %v563_v52, %v559_v21  ;;  %vm2307_vm3 = vcmp.eq.f32.partialorder %v620_v26, 8.507059e+37  ;;  %v627_v36 = vmul.f32 %v2290_v31, %v2161_v28  ;;  %vm631_vm7 = vweird.f32 %v2161_v28  ;;  %vm2333_vm15 = vmor %vm616_vm2, %vm617_vm13 }
 0x292   : > { %652 = vst.msk [vmem:[#allocation2 + $0x18] sm:$0xff] %vm295_vm0, %v1989_v19  ;;  %v604_v4 = vsel %vm2303_vm1, %v2182_v38, %v600_v63  ;;  %v615_v37 = vadd.f32 %v2239_v13, %v614_v33  ;;  %v635_v50 = vand.u32 2147483647, %v2161_v28  ;;  %v2323_v45 = vshrl.u32 %v681_v3, 7 }
 0x293   : > { %653 = vst.msk [vmem:[#allocation2 + $0x20] sm:$0xff] %vm295_vm0, %v1989_v19  ;;  %v579_v46 = vsel %vm2230_vm5, %v578_v61, %v574_v29  ;;  %v594_v47 = vsel %vm2234_vm6, %v593_v2, %v589_v32  ;;  %v623_v48 = vor.u32 1.1754944e-38, %v622_v12  ;;  %v628_v49 = vsub.f32 1.0, %v627_v36 }
 0x294   : > { %654 = vst.msk [vmem:[#allocation2 + $0x28] sm:$0xff] %vm295_vm0, %v1989_v19  ;;  %v619_v51 = vsel %vm2333_vm15, %v2239_v13, %v615_v37  ;;  %v637_v52 = vand.u32 2147483648, %v2161_v28  ;;  %v641_v55 = vmul.f32 %v534_v18, %v2087_v39  ;;  %v642_v56 = vmul.f32 %v549_v24, %v2089_v40  ;;  %v1921_v40 = vld [vmem:[%s2912_s5 + $0x68] sm:$0xff]  ;;  %v1916_v13 = vld [vmem:[%s2912_s5 + $0x40] sm:$0xff]  ;;  %1101 = vmatpush.bf16.msra.mxu3 %v1908_v8 }
 0x295   : > { %655 = vst.msk [vmem:[#allocation2 + $0x30] sm:$0xff] %vm295_vm0, %v1989_v19  ;;  %v609_v59 = vsel %vm2247_vm12, %v608_v1, %v604_v4  ;;  %v629_v61 = vmul.f32 %v2290_v31, %v628_v49  ;;  %vm632_vm4 = vweird.f32 %v2290_v31  ;;  %v684_v39 = vadd.s32 16, %v2323_v45  ;;  %1167 = vmatpush.bf16.msra.mxu0 %v1921_v40  ;;  %1298 = vmatpush.bf16.msra.mxu1 %v1916_v13 }
 0x296   : > { %656 = vst.msk [vmem:[#allocation2 + $0x38] sm:$0xff] %vm295_vm0, %v1989_v19  ;;  %vm2366_vm5 = vcmp.eq.f32.partialorder %v635_v50, 8.507059e+37  ;;  %v643_v58 = vmul.f32 %v564_v34, %v2091_v41  ;;  %v644_v2 = vmul.f32 %v579_v46, %v2093_v42  ;;  %v685_v7 = vadd.s32 24, %v2323_v45  ;;  %vm633_vm6 = vmor %vm631_vm7, %vm632_vm4 }
 0x297   : > { %657 = vst.msk [vmem:[#allocation2 + $0x40] sm:$0xff] %vm295_vm0, %v1989_v19  ;;  %v624_v41 = vsel %vm2307_vm3, %v623_v48, %v619_v51  ;;  %v630_v42 = vadd.f32 %v2290_v31, %v629_v61  ;;  %v2387_v9 = vadd.s32 8, %v2323_v45  ;;  %v686_v10 = vadd.s32 32, %v2323_v45 }
 0x298   : > { %658 = vst.msk [vmem:[#allocation2 + $0x48] sm:$0xff] %vm295_vm0, %v1989_v19  ;;  %v638_v5 = vor.u32 1.1754944e-38, %v637_v52  ;;  %v645_v6 = vmul.f32 %v594_v47, %v2095_v43  ;;  %v646_v14 = vmul.f32 %v609_v59, %v2097_v44  ;;  %v2404_v15 = vadd.s32 40, %v2323_v45 }
 0x299   : > { %661 = vst.msk [vmem:[#allocation2 + $0x10] sm:$0xff] %vm295_vm0, %v641_v55  ;;  %v634_v16 = vsel %vm633_vm6, %v2290_v31, %v630_v42  ;;  %v698_v17 = vand.u32 7, %v2323_v45  ;;  %v712_v18 = vand.u32 7, %v684_v39  ;;  %v2410_v28 = vadd.s32 48, %v2323_v45  ;;  %1168 = vmatpush.bf16.msra.mxu0 %v1920_v11 }
 0x29a   : > { %662 = vst.msk [vmem:[#allocation2 + $0x18] sm:$0xff] %vm295_vm0, %v642_v56  ;;  %v639_v43 = vsel %vm2366_vm5, %v638_v5, %v634_v16  ;;  %v647_v44 = vmul.f32 %v624_v41, %v2105_v53  ;;  %v719_v24 = vand.u32 7, %v685_v7  ;;  %v2417_v25 = vadd.s32 56, %v2323_v45 }
 0x29b   : > { %663 = vst.msk [vmem:[#allocation2 + $0x20] sm:$0xff] %vm295_vm0, %v643_v58  ;;  %v648_v26 = vmul.f32 %v639_v43, %v2107_v54  ;;  %v705_v21 = vand.u32 7, %v2387_v9  ;;  %v726_v22 = vand.u32 7, %v686_v10  ;;  %v2423_v63 = vadd.s32 64, %v2323_v45 }
 0x29c   : > { %664 = vst.msk [vmem:[#allocation2 + $0x28] sm:$0xff] %vm295_vm0, %v644_v2  ;;  %v733_v53 = vand.u32 7, %v2404_v15  ;;  %v2428_v27 = vadd.s32 72, %v2323_v45  ;;  %vm2431_vm8 = vcmp.ne.s32.totalorder %v712_v18, 7  ;;  %v740_v29 = vand.u32 7, %v2410_v28 }
 0x29d   : > { %665 = vst.msk [vmem:[#allocation2 + $0x30] sm:$0xff] %vm295_vm0, %v645_v6  ;;  %vm2436_vm12 = vcmp.ne.s32.totalorder %v712_v18, 0  ;;  %vm2441_vm14 = vcmp.ne.s32.totalorder %v698_v17, 7  ;;  %vm2445_vm2 = vcmp.ne.s32.totalorder %v719_v24, 7  ;;  %v747_v31 = vand.u32 7, %v2417_v25 }
 0x29e   : > { %666 = vst.msk [vmem:[#allocation2 + $0x38] sm:$0xff] %vm295_vm0, %v646_v14  ;;  %vm2450_vm9 = vcmp.ne.s32.totalorder %v719_v24, 0  ;;  %vm2459_vm10 = vcmp.ne.s32.totalorder %v705_v21, 7  ;;  %vm2463_vm11 = vcmp.ne.s32.totalorder %v726_v22, 7  ;;  %v754_v35 = vand.u32 7, %v2423_v63  ;;  %v1912_v63 = vld [vmem:[%s2912_s5 + $0x20] sm:$0xff] }
 0x29f   : > { %667 = vst.msk [vmem:[#allocation2 + $0x40] sm:$0xff] %vm295_vm0, %v647_v44  ;;  %vm2468_vm13 = vcmp.ne.s32.totalorder %v726_v22, 0  ;;  %vm2481_vm1 = vcmp.ne.s32.totalorder %v733_v53, 7  ;;  %v761_v50 = vand.u32 7, %v2428_v27  ;;  %vm2500_vm3 = vcmp.ne.s32.totalorder %v740_v29, 7 }
 0x2a0   : > { %668 = vst.msk [vmem:[#allocation2 + $0x48] sm:$0xff] %vm295_vm0, %v648_v26  ;;  %v2455_v33 = vld [vmem:[#allocation2 + $0x10] sm:$0xff]  ;;  %v2505_v49 = vadd.s32 80, %v2323_v45  ;;  %vm928_vm7 = vsmask.f32 4352  ;;  %vm2521_vm15 = vcmp.ne.s32.totalorder %v747_v31, 7 }
 0x2a1   : > { %649 = vst.msk [vmem:[#allocation2] sm:$0xff] %vm295_vm0, %v1989_v19  ;;  %v2474_v36 = vld [vmem:[#allocation2 + $0x18] sm:$0xff]  ;;  %v909_v4 = vsel %vm2431_vm8, %v2455_v33, 0.0  ;;  %v2489_v46 = vsel %vm2436_vm12, %v2455_v33, 0.0  ;;  %vm882_vm4 = vcmp.ne.s32.totalorder %v754_v35, 7  ;;  %vm2552_vm5 = vcmp.ne.s32.totalorder %v761_v50, 7 }
 0x2a2   : > { %650 = vst.msk [vmem:[#allocation2 + $0x8] sm:$0xff] %vm295_vm0, %v1989_v19  ;;  %v2493_v47 = vld [vmem:[#allocation2 + $0x20] sm:$0xff]  ;;  %v910_v38 = vsel %vm2445_vm2, %v2474_v36, 0.0  ;;  %v2510_v51 = vsel %vm2450_vm9, %v2474_v36, 0.0  ;;  %v768_v6 = vand.u32 7, %v2505_v49  ;;  %vm2584_vm6 = vcmp.ne.s32.totalorder %v705_v21, 0 }
 0x2a3   : > { %659 = vst.msk [vmem:[#allocation2 + $0x50] sm:$0xff] %vm295_vm0, %v1989_v19  ;;  %v911_v52 = vsel %vm2463_vm11, %v2493_v47, 0.0  ;;  %v919_v55 = vpack.c.bf16 %v910_v38, %v909_v4  ;;  %v2517_v56 = vld [vmem:[#allocation2 + $0x28] sm:$0xff]  ;;  %v2528_v57 = vsel %vm2468_vm13, %v2493_v47, 0.0  ;;  %vm2599_vm8 = vcmp.ne.s32.totalorder %v733_v53, 0 }
 0x2a4   : > { %660 = vst.msk [vmem:[#allocation2 + $0x58] sm:$0xff] %vm295_vm0, %v1989_v19  ;;  %v924_v59 = vpack.c.bf16 %v911_v52, %v910_v38  ;;  %v2532_v61 = vld [vmem:[#allocation2 + $0x30] sm:$0xff]  ;;  %v912_v39 = vsel %vm2481_vm1, %v2517_v56, 0.0  ;;  %v2541_v40 = vpack.c.bf16 %v2528_v57, %v2510_v51  ;;  %vm2611_vm12 = vcmp.ne.s32.totalorder %v768_v6, 7 }
 0x2a5   : > { %v2546_v62 = vsel %vm2500_vm3, %v2532_v61, 0.0  ;;  %v2548_v19 = vld [vmem:[#allocation2 + $0x38] sm:$0xff]  ;;  %v1035_v58 = vshrl.u32 %v919_v55, 16  ;;  %v1038_v2 = vshll.u32 %v919_v55, 16  ;;  %v920_v10 = vpack.c.bf16 %v912_v39, %v911_v52 }
 0x2a6   : > { %v938_v7 = vshrl.u32 %v924_v59, 16  ;;  %v941_v8 = vshll.u32 %v924_v59, 16  ;;  %v925_v60 = vpack.c.bf16 %v2546_v62, %v912_v39  ;;  %v2557_v41 = vld [vmem:[#allocation2 + $0x40] sm:$0xff]  ;;  %v914_v42 = vsel %vm2521_vm15, %v2548_v19, 0.0  ;;  %v1925_v59 = vld [vmem:[%s2912_s5 + $0x88] sm:$0xff] }
 0x2a7   : > { %v2563_v11 = vsel %vm882_vm4, %v2557_v41, 0.0  ;;  %v2565_v13 = vld [vmem:[#allocation2 + $0x48] sm:$0xff]  ;;  %v1037_v5 = vrot.slane %v1035_v58, 3  ;;  %v1040_v54 = vrot.slane %v1038_v2, 4  ;;  %v1044_v55 = vshrl.u32 %v920_v10, 16 }
 0x2a8   : > { %v669_v14 = vld [vmem:[#allocation2] sm:$0xff]  ;;  %v940_v16 = vrot.slane %v938_v7, 3  ;;  %v943_v17 = vrot.slane %v941_v8, 4  ;;  %v947_v18 = vshrl.u32 %v925_v60, 16  ;;  %v950_v43 = vshll.u32 %v925_v60, 16 }
 0x2a9   : > { %v2568_v44 = vld [vmem:[#allocation2 + $0x8] sm:$0xff]  ;;  %v907_v24 = vsel %vm2441_vm14, %v669_v14, 0.0  ;;  %v926_v26 = vpack.c.bf16 %v2563_v11, %v914_v42  ;;  %v916_v22 = vsel %vm2552_vm5, %v2565_v13, 0.0  ;;  %v1047_v20 = vshll.u32 %v920_v10, 16 }
 0x2aa   : > { %v908_v30 = vsel %vm2459_vm10, %v2568_v44, 0.0  ;;  %v944_v12 = vor.u32 %v943_v17, %v940_v16  ;;  %v949_v32 = vrot.slane %v947_v18, 3  ;;  %v952_v34 = vrot.slane %v950_v43, 4  ;;  %v1919_v18 = vld [vmem:[%s2912_s5 + $0x58] sm:$0xff] }
 0x2ab   : > { %v918_v23 = vpack.c.bf16 %v908_v30, %v907_v24  ;;  %v923_v37 = vpack.c.bf16 %v909_v4, %v908_v30  ;;  %v956_v38 = vshrl.u32 %v926_v26, 16  ;;  %v959_v48 = vshll.u32 %v926_v26, 16 }
 0x2ac   : > { %v953_v1 = vor.u32 %v952_v34, %v949_v32  ;;  %v927_v52 = vpack.c.bf16 %v916_v22, %v916_v22  ;;  %v1046_v43 = vrot.slane %v1044_v55, 3  ;;  %v1049_v24 = vrot.slane %v1047_v20, 4 }
 0x2ad   : > { %v930_v39 = vshrl.u32 %v923_v37, 16  ;;  %v933_v0 = vshll.u32 %v923_v37, 16  ;;  %v958_v58 = vrot.slane %v956_v38, 3  ;;  %v961_v3 = vrot.slane %v959_v48, 4  ;;  %v1913_v37 = vld [vmem:[%s2912_s5 + $0x28] sm:$0xff]  ;;  %v1923_v48 = vld [vmem:[%s2912_s5 + $0x78] sm:$0xff] }
 0x2ae   : > { %v954_v4 = vsel %vm928_vm7, %v944_v12, %v953_v1  ;;  %v965_v7 = vshrl.u32 %v927_v52, 16  ;;  %v968_v8 = vshll.u32 %v927_v52, 16  ;;  %v1027_v60 = vshrl.u32 %v918_v23, 16 }
 0x2af   : > { %v932_v10 = vrot.slane %v930_v39, 3  ;;  %v935_v14 = vrot.slane %v933_v0, 4  ;;  %1805 = vmatmul.msk.bf16.vlgmr.msrb.gmra.mxu1 %vm295_vm0, %v954_v4  ;;  %v962_v16 = vor.u32 %v961_v3, %v958_v58  ;;  %v1030_v17 = vshll.u32 %v918_v23, 16  ;;  %v2620_v39 = vld [vmem:[#allocation2 + $0x50] sm:$0xff] }
 0x2b0   : > { %v967_v9 = vrot.slane %v965_v7, 3  ;;  %v970_v21 = vrot.slane %v968_v8, 4  ;;  %1669 = vmatpush.bf16.msrb.mxu1 %v1925_v59  ;;  %v1029_v32 = vrot.slane %v1027_v60, 3  ;;  %v1123_v52 = vpack.c.bf16 %v916_v22, %v2563_v11 }
 0x2b1   : > { %v936_v26 = vor.u32 %v935_v14, %v932_v10  ;;  %v963_v30 = vsel %vm928_vm7, %v953_v1, %v962_v16  ;;  %v1032_v34 = vrot.slane %v1030_v17, 4  ;;  %v921_v1 = vpack.c.bf16 %v914_v42, %v2546_v62 }
 0x2b2   : > { %1806 = vmatmul.msk.bf16.vlgmr.msrb.gmra.mxu2 %vm295_vm0, %v963_v30  ;;  %v971_v38 = vor.u32 %v970_v21, %v967_v9  ;;  %v1041_v53 = vor.u32 %v1040_v54, %v1037_v5  ;;  %v1198_v20 = vpack.c.bf16 %v2455_v33, %v2568_v44  ;;  %v1263_v59 = vpack.c.bf16 %v2474_v36, %v2455_v33 }
 0x2b3   : > { %v945_v15 = vsel %vm928_vm7, %v936_v26, %v944_v12  ;;  %1599 = vmatpush.bf16.msrb.mxu2 %v1919_v18  ;;  %vm2624_vm14 = vcmp.ne.s32.totalorder %v740_v29, 0  ;;  %vm2630_vm2 = vcmp.ne.s32.totalorder %v747_v31, 0  ;;  %v2636_v22 = vor.u32 %v1049_v24, %v1046_v43 }
 0x2b4   : > { %1804 = vmatmul.msk.bf16.vlgmr.msrb.gmra.mxu0 %vm295_vm0, %v945_v15  ;;  %v972_v5 = vsel %vm928_vm7, %v962_v16, %v971_v38  ;;  %v1053_v54 = vshrl.u32 %v921_v1, 16  ;;  %v1056_v12 = vshll.u32 %v921_v1, 16  ;;  %v1033_v28 = vor.u32 %v1032_v34, %v1029_v32 }
 0x2b5   : > { %1807 = vmatmul.msk.bf16.vlgmr.msrb.gmra.mxu3 %vm295_vm0, %v972_v5  ;;  %1497 = vmatpush.bf16.msrb.mxu0 %v1913_v37  ;;  %v1126_v29 = vshrl.u32 %v1123_v52, 16  ;;  %v1129_v0 = vshll.u32 %v1123_v52, 16  ;;  %v922_v25 = vpack.c.bf16 %v2563_v11, %v2563_v11  ;;  %v917_v3 = vsel %vm2611_vm12, %v2620_v39, 0.0  ;;  %v1922_v11 = vld [vmem:[%s2912_s5 + $0x70] sm:$0xff] }
 0x2b6   : > { %1350 = vmatpush.bf16.msrb.mxu3 %v1923_v48  ;;  %v1055_v31 = vrot.slane %v1053_v54, 3  ;;  %v1058_v58 = vrot.slane %v1056_v12, 4  ;;  %v2646_v4 = vpack.c.bf16 %v2557_v41, %v2548_v19  ;;  %vm1430_vm9 = vsmask.f32 7424 }
 0x2b7   : > { %v1128_v7 = vrot.slane %v1126_v29, 3  ;;  %v1131_v8 = vrot.slane %v1129_v0, 4  ;;  %v1062_v60 = vshrl.u32 %v922_v25, 16  ;;  %v1065_v10 = vshll.u32 %v922_v25, 16 }
 0x2b8   : > { %vm2650_vm10 = vcmp.ne.s32.totalorder %v754_v35, 0  ;;  %v2656_v14 = vsel %vm928_vm7, %v1041_v53, %v2636_v22  ;;  %v1124_v16 = vpack.c.bf16 %v917_v3, %v917_v3  ;;  %v1266_v17 = vpack.c.bf16 %v2565_v13, %v2557_v41 }
 0x2b9   : > { %v1414_v18 = vsel %vm2584_vm6, %v2568_v44, 0.0  ;;  %vm2665_vm11 = vcmp.ne.s32.totalorder %v761_v50, 0  ;;  %v2669_v35 = vor.u32 %v1058_v58, %v1055_v31  ;;  %v1064_v9 = vrot.slane %v1062_v60, 3  ;;  %1498 = vmatpush.bf16.msrb.mxu0 %v1912_v63 }
 0x2ba   : > { %v1067_v21 = vrot.slane %v1065_v10, 4  ;;  %v1425_v43 = vpack.c.bf16 %v2489_v46, %v1414_v18  ;;  %v1042_v24 = vsel %vm928_vm7, %v1033_v28, %v1041_v53  ;;  %v1135_v26 = vshrl.u32 %v1124_v16, 16  ;;  %1351 = vmatpush.bf16.msrb.mxu3 %v1922_v11 }
 0x2bb   : > { %v1138_v30 = vshll.u32 %v1124_v16, 16  ;;  %v1439_v32 = vshll.u32 %v2541_v40, 16  ;;  %v2674_v2 = vor.u32 %v1131_v8, %v1128_v7  ;;  %v1418_v1 = vsel %vm2599_vm8, %v2517_v56, 0.0 }
 0x2bc   : > { %v1068_v34 = vor.u32 %v1067_v21, %v1064_v9  ;;  %v1432_v27 = vshrl.u32 %v1425_v43, 16  ;;  %v1434_v50 = vshll.u32 %v1425_v43, 16  ;;  %v1137_v37 = vrot.slane %v1135_v26, 3  ;;  %v1918_v21 = vld [vmem:[%s2912_s5 + $0x50] sm:$0xff] }
 0x2bd   : > { %v1140_v38 = vrot.slane %v1138_v30, 4  ;;  %v1441_v48 = vrot.slane %v1439_v32, 1  ;;  %v1528_v15 = vpack.c.bf16 %v2510_v51, %v2489_v46  ;;  %v1529_v53 = vpack.c.bf16 %v1418_v1, %v2528_v57  ;;  %1600 = vmatpush.bf16.msrb.mxu2 %v1918_v21 }
 0x2be   : > { %v2681_v52 = vsel %vm928_vm7, %v2669_v35, %v1068_v34  ;;  %v1436_v55 = vrot.slane %v1434_v50, 1  ;;  %v1419_v54 = vsel %vm2624_vm14, %v2532_v61, 0.0  ;;  %v1443_v12 = vshrl.u32 %v2541_v40, 16 }
 0x2bf   : > { %v1141_v5 = vor.u32 %v1140_v38, %v1137_v37  ;;  %v1420_v23 = vsel %vm2630_vm2, %v2548_v19, 0.0  ;;  %1852 = vmatmul.msk.bf16.vlgmr.msra.gmra.mxu1 %vm295_vm0, %v1263_v59  ;;  %v1534_v29 = vshrl.u32 %v1528_v15, 16  ;;  %v1536_v0 = vshll.u32 %v1528_v15, 16 }
 0x2c0   : > { %v1437_v28 = vor.u32 %v1436_v55, %v1432_v27  ;;  %v1541_v25 = vshll.u32 %v1529_v53, 16  ;;  %v1427_v51 = vpack.c.bf16 %v1419_v54, %v1418_v1  ;;  %v1445_v57 = vor.u32 %v1443_v12, %v1441_v48 }
 0x2c1   : > { %v2696_v46 = vsel %vm928_vm7, %v2674_v2, %v1141_v5  ;;  %v1530_v62 = vpack.c.bf16 %v1420_v23, %v1419_v54  ;;  %v1538_v40 = vrot.slane %v1536_v0, 1  ;;  %v1545_v42 = vshrl.u32 %v1529_v53, 16 }
 0x2c2   : > { %v2699_v31 = vsel %vm1430_vm9, %v1437_v28, %v1441_v48  ;;  %v1543_v58 = vrot.slane %v1541_v25, 1  ;;  %1840 = vmatmul.msk.bf16.vlgmr.msra.gmra.mxu2 %vm295_vm0, %v1198_v20  ;;  %v1447_v59 = vshll.u32 %v1427_v51, 16  ;;  %v1421_v7 = vsel %vm2650_vm10, %v2557_v41, 0.0 }
 0x2c3   : > { %v1549_v3 = vshll.u32 %v1530_v62, 16  ;;  %v1451_v8 = vshrl.u32 %v1427_v51, 16  ;;  %v1539_v60 = vor.u32 %v1538_v40, %v1534_v29  ;;  %v1428_v16 = vpack.c.bf16 %v1421_v7, %v1420_v23  ;;  %v680_v51 = vld [vmem:[#allocation2 + $0x58] sm:$0xff] }
 0x2c4   : > { %v1547_v10 = vor.u32 %v1545_v42, %v1543_v58  ;;  %v1422_v18 = vsel %vm2665_vm11, %v2565_v13, 0.0  ;;  %1828 = vmatmul.msk.bf16.vlgmr.msra.gmra.mxu0 %vm295_vm0, %v2656_v14  ;;  %v1449_v33 = vrot.slane %v1447_v59, 1  ;;  %v1553_v9 = vshrl.u32 %v1530_v62, 16 }
 0x2c5   : > { %v1551_v44 = vrot.slane %v1549_v3, 1  ;;  %v1531_v20 = vpack.c.bf16 %v1422_v18, %v1421_v7  ;;  %1816 = vmatmul.msk.bf16.vlgmr.msra.gmra.mxu3 %vm295_vm0, %v1042_v24  ;;  %v2724_v43 = vsel %vm1430_vm9, %v1539_v60, %v1543_v58  ;;  %v1455_v26 = vshll.u32 %v1428_v16, 16  ;;  %v1924_v24 = vld [vmem:[%s2912_s5 + $0x80] sm:$0xff] }
 0x2c6   : > { %vm1390_vm13 = vcmp.ne.s32.totalorder %v768_v6, 0  ;;  %v2732_v30 = vsel %vm1430_vm9, %v1445_v57, %v1449_v33  ;;  %v1453_v34 = vor.u32 %v1451_v8, %v1449_v33  ;;  %v1328_v49 = vpack.c.bf16 %v2620_v39, %v2565_v13  ;;  %1670 = vmatpush.bf16.msrb.mxu1 %v1924_v24 }
 0x2c7   : > { %v2735_v32 = vsel %vm1430_vm9, %v1547_v10, %v1551_v44  ;;  %v1555_v27 = vor.u32 %v1553_v9, %v1551_v44  ;;  %v1457_v50 = vrot.slane %v1455_v26, 1  ;;  %v1557_v37 = vshll.u32 %v1531_v20, 16 }
 0x2c8   : > { %v1423_v38 = vsel %vm1390_vm13, %v2620_v39, 0.0  ;;  %v1459_v6 = vshrl.u32 %v1428_v16, 16  ;;  %v1429_v1 = vpack.c.bf16 %v1422_v18, %v1422_v18  ;;  %v1561_v5 = vshrl.u32 %v1531_v20, 16 }
 0x2c9   : > { %v1630_v48 = vpack.c.bf16 %v1423_v38, %v1422_v18  ;;  %v1532_v55 = vpack.c.bf16 %v1423_v38, %v1423_v38  ;;  %v1458_v15 = vsel %vm1430_vm9, %v1453_v34, %v1457_v50  ;;  %v1559_v53 = vrot.slane %v1557_v37, 1 }
 0x2ca   : > { %v693_v54 = vadd.s32 88, %v2323_v45  ;;  %v1461_v12 = vor.u32 %v1459_v6, %v1457_v50  ;;  %v1463_v28 = vshll.u32 %v1429_v1, 16  ;;  %v1264_v42 = vpack.c.bf16 %v2517_v56, %v2493_v47 }
 0x2cb   : > { %v1633_v23 = vshll.u32 %v1630_v48, 16  ;;  %v1565_v29 = vshll.u32 %v1532_v55, 16  ;;  %v1560_v0 = vsel %vm1430_vm9, %v1555_v27, %v1559_v53  ;;  %v1563_v25 = vor.u32 %v1561_v5, %v1559_v53 }
 0x2cc   : > { %v775_v57 = vand.u32 7, %v693_v54  ;;  %v1465_v40 = vrot.slane %v1463_v28, 1  ;;  %v1637_v60 = vshrl.u32 %v1630_v48, 16  ;;  %v1199_v10 = vpack.c.bf16 %v2493_v47, %v2474_v36 }
 0x2cd   : > { %v1635_v62 = vrot.slane %v1633_v23, 1  ;;  %v1567_v58 = vrot.slane %v1565_v29, 1  ;;  %v1060_v33 = vsel %vm928_vm7, %v2636_v22, %v2669_v35  ;;  %v1265_v9 = vpack.c.bf16 %v2548_v19, %v2532_v61 }
 0x2ce   : > { %vm1391_vm1 = vcmp.ne.s32.totalorder %v775_v57, 0  ;;  %v1466_v45 = vsel %vm1430_vm9, %v1461_v12, %v1465_v40  ;;  %v1200_v36 = vpack.c.bf16 %v2532_v61, %v2517_v56  ;;  %v1133_v47 = vsel %vm928_vm7, %v2669_v35, %v2674_v2 }
 0x2cf   : > { %v1636_v59 = vsel %vm1430_vm9, %v1461_v12, %v1635_v62  ;;  %v1568_v3 = vsel %vm1430_vm9, %v1563_v25, %v1567_v58  ;;  %v1424_v7 = vsel %vm1391_vm1, %v680_v51, 0.0  ;;  %1853 = vmatmul.msk.bf16.gmra.mxu1 %vm295_vm0, %v1264_v42  ;;  %v1639_v16 = vor.u32 %v1637_v60, %v1635_v62 }
 0x2d0   : > { %v1631_v8 = vpack.c.bf16 %v1424_v7, %v1424_v7 }
 0x2d2   : > { %v1641_v18 = vshll.u32 %v1631_v8, 16  ;;  %1841 = vmatmul.msk.bf16.gmra.mxu2 %vm295_vm0, %v1199_v10 }
 0x2d4   : > { %v1643_v44 = vrot.slane %v1641_v18, 1  ;;  %1829 = vmatmul.msk.bf16.gmra.mxu0 %vm295_vm0, %v1060_v33  ;;  %v2850_v18 = vld [vmem:[%s2913_s6] ss:$0 sm:$0xff] }
 0x2d5   : > { %1817 = vmatmul.msk.bf16.gmra.mxu3 %vm295_vm0, %v2656_v14 }
 0x2d6   : > { %v1644_v20 = vsel %vm1430_vm9, %v1639_v16, %v1643_v44 }
 0x2df   : > { %1854 = vmatmul.msk.bf16.gmra.mxu1 %vm295_vm0, %v1265_v9 }
 0x2e2   : > { %1842 = vmatmul.msk.bf16.gmra.mxu2 %vm295_vm0, %v1200_v36 }
 0x2e4   : > { %1830 = vmatmul.msk.bf16.gmra.mxu0 %vm295_vm0, %v1133_v47 }
 0x2e5   : > { %1818 = vmatmul.msk.bf16.gmra.mxu3 %vm295_vm0, %v1060_v33 }
 0x2ef   : > { %1855 = vmatmul.msk.bf16.gmra.mxu1 %vm295_vm0, %v1266_v17 }
 0x2f2   : > { %1843 = vmatmul.msk.bf16.gmra.mxu2 %vm295_vm0, %v2646_v4 }
 0x2f4   : > { %1831 = vmatmul.msk.bf16.gmra.mxu0 %vm295_vm0, %v2696_v46 }
 0x2f5   : > { %1819 = vmatmul.msk.bf16.gmra.mxu3 %vm295_vm0, %v2681_v52 }
 0x2ff   : > { %1900 = vmatmul.msk.bf16.vlgmr.msrb.gmra.mxu1 %vm295_vm0, %v2732_v30 }
 0x302   : > { %1888 = vmatmul.msk.bf16.vlgmr.msrb.gmra.mxu2 %vm295_vm0, %v2724_v43 }
 0x304   : > { %1876 = vmatmul.msk.bf16.vlgmr.msrb.gmra.mxu0 %vm295_vm0, %v2699_v31 }
 0x305   : > { %1864 = vmatmul.msk.bf16.vlgmr.msrb.gmra.mxu3 %vm295_vm0, %v1199_v10 }
 0x30f   : > { %1901 = vmatmul.msk.bf16.gmra.mxu1 %vm295_vm0, %v1458_v15 }
 0x312   : > { %1889 = vmatmul.msk.bf16.gmra.mxu2 %vm295_vm0, %v2735_v32 }
 0x314   : > { %1877 = vmatmul.msk.bf16.gmra.mxu0 %vm295_vm0, %v2732_v30 }
 0x315   : > { %1865 = vmatmul.msk.bf16.gmra.mxu3 %vm295_vm0, %v1200_v36 }
 0x31f   : > { %1902 = vmatmul.msk.bf16.gmra.mxu1 %vm295_vm0, %v1636_v59 }
 0x322   : > { %1890 = vmatmul.msk.bf16.gmra.mxu2 %vm295_vm0, %v1560_v0 }
 0x324   : > { %1878 = vmatmul.msk.bf16.gmra.mxu0 %vm295_vm0, %v1458_v15 }
 0x325   : > { %1866 = vmatmul.msk.bf16.gmra.mxu3 %vm295_vm0, %v2646_v4 }
 0x32c   : > { %v1011_v56 = vpop.f32.mrf.mxu1 }
 0x32f   : > { %1903 = vmatmul.msk.bf16.gmra.mxu1 %vm295_vm0, %v1644_v20 }
 0x331   : > { %v1006_v61 = vpop.f32.mrf.mxu0 }
 0x332   : > { %1891 = vmatmul.msk.bf16.gmra.mxu2 %vm295_vm0, %v1568_v3 }
 0x334   : > { %1879 = vmatmul.msk.bf16.gmra.mxu0 %vm295_vm0, %v1466_v45  ;;  %v2801_v19 = vpop.f32.mrf.mxu1 }
 0x335   : > { %1867 = vmatmul.msk.bf16.gmra.mxu3 %vm295_vm0, %v1328_v49  ;;  %v2807_v41 = vpop.f32.mrf.mxu2 }
 0x338   : > { %v2809_v22 = vpop.f32.mrf.mxu3 }
 0x339   : > { %v1008_v4 = vpop.f32.mrf.mxu0 }
 0x33c   : > { %v1300_v14 = vpop.f32.mrf.mxu1 }
 0x33d   : > { %v2811_v17 = vpop.f32.mrf.mxu2 }
 0x340   : > { %v2813_v35 = vpop.f32.mrf.mxu3 }
 0x341   : > { %v1170_v2 = vpop.f32.mrf.mxu0 }
 0x344   : > { %v1302_v52 = vpop.f32.mrf.mxu1 }
 0x345   : > { %v1235_v46 = vpop.f32.mrf.mxu2 }
 0x348   : > { %v1103_v31 = vpop.f32.mrf.mxu3 }
 0x349   : > { %v1172_v11 = vpop.f32.mrf.mxu0  ;;  %v1104_v23 = vadd.f32 %v1103_v31, %v1006_v61 }
 0x34b   : > { %v1190_v29 = vadd.f32 %v1170_v2, %v1104_v23 }
 0x34c   : > { %v1305_v21 = vpop.f32.mrf.mxu1 }
 0x34d   : > { %v1237_v63 = vpop.f32.mrf.mxu2  ;;  %v1255_v57 = vadd.f32 %v1235_v46, %v1190_v29 }
 0x34f   : > { %v1320_v42 = vadd.f32 %v1300_v14, %v1255_v57 }
 0x350   : > { %v1105_v13 = vpop.f32.mrf.mxu3 }
 0x351   : > { %v1175_v39 = vpop.f32.mrf.mxu0  ;;  %v1106_v62 = vadd.f32 %v1105_v13, %v1008_v4 }
 0x353   : > { %v1191_v58 = vadd.f32 %v1172_v11, %v1106_v62 }
 0x354   : > { %v2815_v43 = vpop.f32.mrf.mxu1 }
 0x355   : > { %v1240_v26 = vpop.f32.mrf.mxu2  ;;  %v1256_v8 = vadd.f32 %v1237_v63, %v1191_v58 }
 0x357   : > { %v1321_v9 = vadd.f32 %v1302_v52, %v1256_v8 }
 0x358   : > { %v1108_v24 = vpop.f32.mrf.mxu3 }
 0x359   : > { %v1177_v30 = vpop.f32.mrf.mxu0  ;;  %v1109_v60 = vadd.f32 %v1108_v24, %v1011_v56 }
 0x35b   : > { %v1192_v44 = vadd.f32 %v1175_v39, %v1109_v60 }
 0x35c   : > { %v2817_v32 = vpop.f32.mrf.mxu1 }
 0x35d   : > { %v1242_v34 = vpop.f32.mrf.mxu2  ;;  %v1257_v4 = vadd.f32 %v1240_v26, %v1192_v44 }
 0x35f   : > { %v1322_v13 = vadd.f32 %v1305_v21, %v1257_v4 }
 0x360   : > { %v1110_v27 = vpop.f32.mrf.mxu3 }
 0x361   : > { %v2819_v50 = vpop.f32.mrf.mxu0  ;;  %v1111_v14 = vadd.f32 %v1110_v27, %v2801_v19 }
 0x363   : > { %v1193_v11 = vadd.f32 %v1177_v30, %v1111_v14 }
 0x364   : > { %v2821_v37 = vpop.f32.mrf.mxu1 }
 0x365   : > { %v2823_v38 = vpop.f32.mrf.mxu2 }
 0x368   : > { %v1113_v49 = vpop.f32.mrf.mxu3 }
 0x369   : > { %v2825_v6 = vpop.f32.mrf.mxu0  ;;  %v1114_v26 = vadd.f32 %v1113_v49, %v2807_v41 }
 0x36b   : > { %v1194_v62 = vadd.f32 %v2819_v50, %v1114_v26 }
 0x36c   : > { %v2827_v48 = vpop.f32.mrf.mxu1 }
 0x36d   : > { %v2829_v1 = vpop.f32.mrf.mxu2 }
 0x370   : > { %v2831_v55 = vpop.f32.mrf.mxu3 }
 0x371   : > { %v2833_v15 = vpop.f32.mrf.mxu0  ;;  %v1116_v41 = vadd.f32 %v2831_v55, %v2811_v17 }
 0x373   : > { %v1195_v50 = vadd.f32 %v2825_v6, %v1116_v41 }
 0x374   : > { %v2837_v5 = vpop.f32.mrf.mxu1 }
 0x375   : > { %v2835_v53 = vpop.f32.mrf.mxu2 }
 0x378   : > { %v2839_v54 = vpop.f32.mrf.mxu3 }
 0x379   : > { %v2841_v12 = vpop.f32.mrf.mxu0  ;;  %v1119_v17 = vadd.f32 %v2839_v54, %v2809_v22 }
 0x37b   : > { %v1196_v6 = vadd.f32 %v2833_v15, %v1119_v17 }
 0x37c   : > { %v1672_v25 = vpop.f32.mrf.mxu1 }
 0x37d   : > { %v2843_v28 = vpop.f32.mrf.mxu2 }
 0x380   : > { %v2845_v0 = vpop.f32.mrf.mxu3 }
 0x381   : > { %v1500_v51 = vpop.f32.mrf.mxu0  ;;  %v1121_v22 = vadd.f32 %v2845_v0, %v2813_v35 }
 0x383   : > { %v1197_v15 = vadd.f32 %v2841_v12, %v1121_v22 }
 0x384   : > { %v1674_v7 = vpop.f32.mrf.mxu1 }
 0x385   : > { %v1602_v40 = vpop.f32.mrf.mxu2 }
 0x388   : > { %v1353_v59 = vpop.f32.mrf.mxu3 }
 0x389   : > { %v1373_v45 = vadd.f32 %v1353_v59, %v1320_v42  ;;  %v1502_v3 = vpop.f32.mrf.mxu0  ;;  %v1259_v59 = vadd.f32 %v2823_v38, %v1194_v62 }
 0x38b   : > { %v1520_v10 = vadd.f32 %v1500_v51, %v1373_v45 }
 0x38c   : > { %v1677_v52 = vpop.f32.mrf.mxu1 }
 0x38d   : > { %v1622_v16 = vadd.f32 %v1602_v40, %v1520_v10  ;;  %v1604_v33 = vpop.f32.mrf.mxu2 }
 0x38f   : > { %v1692_v20 = vadd.f32 %v1672_v25, %v1622_v16  ;;  %v1258_v25 = vadd.f32 %v1242_v34, %v1193_v11  ;;  %v1260_v16 = vadd.f32 %v2829_v1, %v1195_v50 }
 0x390   : > { %v1355_v36 = vpop.f32.mrf.mxu3 }
 0x391   : > { %v1704_v47 = vadd.f32 %v2850_v18, %v1692_v20  ;;  %v1374_v56 = vadd.f32 %v1355_v36, %v1321_v9  ;;  %v1505_v61 = vpop.f32.mrf.mxu0  ;;  %v1323_v21 = vadd.f32 %v2815_v43, %v1258_v25  ;;  %v1324_v43 = vadd.f32 %v2817_v32, %v1259_v59 }
 0x392   : > { %v1325_v32 = vadd.f32 %v2821_v37, %v1260_v16 }
 0x393   : > { %1712 = vst.msk [vmem:[%s2857_s21] sm:$0xff] %vm295_vm0, %v1704_v47  ;;  %v1521_v2 = vadd.f32 %v1502_v3, %v1374_v56 }
 0x394   : > { %v1679_v57 = vpop.f32.mrf.mxu1 }
 0x395   : > { %v1623_v46 = vadd.f32 %v1604_v33, %v1521_v2  ;;  %v1607_v31 = vpop.f32.mrf.mxu2 }
 0x397   : > { %v1693_v63 = vadd.f32 %v1674_v7, %v1623_v46 }
 0x398   : > { %v1358_v39 = vpop.f32.mrf.mxu3 }
 0x399   : > { %v1705_v24 = vadd.f32 %v2850_v18, %v1693_v63  ;;  %v1375_v23 = vadd.f32 %v1358_v39, %v1322_v13  ;;  %v1507_v29 = vpop.f32.mrf.mxu0 }
 0x39b   : > { %1713 = vst.msk [vmem:[%s2857_s21 + $0x8] sm:$0xff] %vm295_vm0, %v1705_v24  ;;  %v1522_v19 = vadd.f32 %v1505_v61, %v1375_v23  ;;  %v1261_v61 = vadd.f32 %v2835_v53, %v1196_v6  ;;  %v1262_v53 = vadd.f32 %v2843_v28, %v1197_v15 }
 0x39c   : > { %v1682_v8 = vpop.f32.mrf.mxu1 }
 0x39d   : > { %v1624_v27 = vadd.f32 %v1607_v31, %v1522_v19  ;;  %v1609_v51 = vpop.f32.mrf.mxu2  ;;  %v1326_v37 = vadd.f32 %v2827_v48, %v1261_v61  ;;  %v1327_v12 = vadd.f32 %v2837_v5, %v1262_v53 }
 0x39f   : > { %v1694_v30 = vadd.f32 %v1677_v52, %v1624_v27 }
 0x3a0   : > { %v1360_v40 = vpop.f32.mrf.mxu3 }
 0x3a1   : > { %v1706_v58 = vadd.f32 %v2850_v18, %v1694_v30  ;;  %v1376_v42 = vadd.f32 %v1360_v40, %v1323_v21  ;;  %v1510_v49 = vpop.f32.mrf.mxu0 }
 0x3a3   : > { %1714 = vst.msk [vmem:[%s2857_s21 + $0x10] sm:$0xff] %vm295_vm0, %v1706_v58  ;;  %v1523_v34 = vadd.f32 %v1507_v29, %v1376_v42 }
 0x3a4   : > { %v1684_v1 = vpop.f32.mrf.mxu1 }
 0x3a5   : > { %v1625_v45 = vadd.f32 %v1609_v51, %v1523_v34  ;;  %v1612_v3 = vpop.f32.mrf.mxu2 }
 0x3a7   : > { %v1695_v7 = vadd.f32 %v1679_v57, %v1625_v45 }
 0x3a8   : > { %v1363_v60 = vpop.f32.mrf.mxu3 }
 0x3a9   : > { %v1707_v10 = vadd.f32 %v2850_v18, %v1695_v7  ;;  %v1377_v38 = vadd.f32 %v1363_v60, %v1324_v43  ;;  %v1512_v44 = vpop.f32.mrf.mxu0 }
 0x3ab   : > { %1715 = vst.msk [vmem:[%s2857_s21 + $0x18] sm:$0xff] %vm295_vm0, %v1707_v10  ;;  %v1524_v55 = vadd.f32 %v1510_v49, %v1377_v38 }
 0x3ac   : > { %v1687_v0 = vpop.f32.mrf.mxu1 }
 0x3ad   : > { %v1626_v33 = vadd.f32 %v1612_v3, %v1524_v55  ;;  %v1614_v36 = vpop.f32.mrf.mxu2 }
 0x3af   : > { %v1696_v20 = vadd.f32 %v1682_v8, %v1626_v33 }
 0x3b0   : > { %v1365_v9 = vpop.f32.mrf.mxu3 }
 0x3b1   : > { %v1708_v47 = vadd.f32 %v2850_v18, %v1696_v20  ;;  %v1378_v56 = vadd.f32 %v1365_v9, %v1325_v32  ;;  %v1515_v2 = vpop.f32.mrf.mxu0 }
 0x3b3   : > { %1716 = vst.msk [vmem:[%s2857_s21 + $0x20] sm:$0xff] %vm295_vm0, %v1708_v47  ;;  %v1525_v54 = vadd.f32 %v1512_v44, %v1378_v56 }
 0x3b4   : > { %v1689_v28 = vpop.f32.mrf.mxu1 }
 0x3b5   : > { %v1627_v4 = vadd.f32 %v1614_v36, %v1525_v54  ;;  %v1617_v11 = vpop.f32.mrf.mxu2 }
 0x3b7   : > { %v1697_v14 = vadd.f32 %v1684_v1, %v1627_v4 }
 0x3b8   : > { %v1368_v52 = vpop.f32.mrf.mxu3 }
 0x3b9   : > { %v1709_v46 = vadd.f32 %v2850_v18, %v1697_v14  ;;  %v1379_v31 = vadd.f32 %v1368_v52, %v1326_v37  ;;  %v1517_v23 = vpop.f32.mrf.mxu0 }
 0x3bb   : > { %1717 = vst.msk [vmem:[%s2857_s21 + $0x28] sm:$0xff] %vm295_vm0, %v1709_v46  ;;  %v1526_v35 = vadd.f32 %v1515_v2, %v1379_v31 }
 0x3bd   : > { %v1628_v63 = vadd.f32 %v1617_v11, %v1526_v35  ;;  %v1619_v25 = vpop.f32.mrf.mxu2 }
 0x3bf   : > { %v1698_v13 = vadd.f32 %v1687_v0, %v1628_v63 }
 0x3c0   : > { %v1370_v39 = vpop.f32.mrf.mxu3 }
 0x3c1   : > { %v1710_v48 = vadd.f32 %v2850_v18, %v1698_v13  ;;  %v1380_v24 = vadd.f32 %v1370_v39, %v1327_v12 }
 0x3c3   : > { %1718 = vst.msk [vmem:[%s2857_s21 + $0x30] sm:$0xff] %vm295_vm0, %v1710_v48  ;;  %v1527_v29 = vadd.f32 %v1517_v23, %v1380_v24 }
 0x3c5   : > { %v1629_v26 = vadd.f32 %v1619_v25, %v1527_v29 }
 0x3c7   : > { %v1699_v19 = vadd.f32 %v1689_v28, %v1629_v26 }
 0x3c9   : > { %v1711_v27 = vadd.f32 %v2850_v18, %v1699_v19 }
 0x3cb   : > { %1719 = vst.msk [vmem:[%s2857_s21 + $0x38] sm:$0xff] %vm295_vm0, %v1711_v27 }
 0x3cc PF: > { %s17_s24 = sadd.s32 1, %s1986_s24  }
 0x3cd   : > { %p14_p4 = scmp.ge.s32.totalorder %s17_s24, 4  }
 0x3cf   :  { %16 = sbr.rel (!%p14_p4) target bundleno = 1 (0x1), region = 78 }

</bundles_post_ra>
